<compile_context>
chip_gen: v6e
topology: v6e:2x2x1
jax: 0.10.0
libtpu: 0.0.40
codegen_flags: <defaults>
</compile_context>

<pallas_src>
import numpy as np
import jax
import jax.numpy as jnp
from jax import lax
from jax.experimental import pallas as pl
from jax.experimental.pallas import tpu as pltpu


# ----------------------------- Pallas kernel -------------------------------

def folding_decoder_kernel(g_ref, xc_ref, wff_ref, bff_ref, winp_ref,
                           wout_ref, bout_ref, out_ref):
    """One (point-tile, batch) step of the two folding MLPs, transposed layout.

    g_ref:    [2, tm]     plane-grid coords (points on lanes), f32
    xc_ref:   [2, F, 1]   precomputed per-batch  x @ W1x + b1  for folding1/2, f32
    wff_ref:  [4, F, F]   bf16 transposed residual-folded weights:
                          (f1_W2+I)^T, (f1_W3+I)^T, (f2_W2+I)^T, (f2_W3+I)^T
    bff_ref:  [4, F, 1]   matching biases, f32 columns
    winp_ref: [5, F, 1]   rows of f1_W1g (2) and f2_W1p (3) as f32 columns (rank-1 terms)
    wout_ref: [2, 3, F]   bf16 transposed output projections (folding1, folding2)
    bout_ref: [2, 3, 1]   output biases, f32 columns
    out_ref:  [3, tm]     folded 3-D points, lane-dense tile of [B, 3, N], f32
    """
    f32 = jnp.float32
    bf16 = jnp.bfloat16
    g = g_ref[...]                                            # [2, tm]

    def mm(w_bf16, h_f32):
        # bf16 operands on the MXU, f32 accumulation. h stays f32 everywhere else.
        return jnp.dot(w_bf16, h_f32.astype(bf16), preferred_element_type=f32)

    # ---- folding1: Linear(F+2->F), ReLU, Res, ReLU, Res, ReLU, Linear(F->3) ----
    extra1 = winp_ref[0] * g[0:1, :] + winp_ref[1] * g[1:2, :]          # [F, tm] rank-1, VPU
    h = jnp.maximum(xc_ref[0] + extra1, 0.0)                            # [F, tm]
    h = jnp.maximum(mm(wff_ref[0], h) + bff_ref[0], 0.0)
    h = jnp.maximum(mm(wff_ref[1], h) + bff_ref[1], 0.0)
    p1 = mm(wout_ref[0], h) + bout_ref[0]                               # [3, tm]

    # ---- folding2: Linear(F+3->F), ReLU, Res, ReLU, Res, ReLU, Linear(F->3) ----
    extra2 = (winp_ref[2] * p1[0:1, :]
              + winp_ref[3] * p1[1:2, :]
              + winp_ref[4] * p1[2:3, :])                               # [F, tm]
    h = jnp.maximum(xc_ref[1] + extra2, 0.0)
    h = jnp.maximum(mm(wff_ref[2], h) + bff_ref[2], 0.0)
    h = jnp.maximum(mm(wff_ref[3], h) + bff_ref[3], 0.0)
    out_ref[...] = mm(wout_ref[1], h) + bout_ref[1]                     # lane-dense store


# ----------------------------- helpers --------------------------------------

def build_plane_grid(num_points_sqrt):
    """Regular [-1,1]^2 plane grid, itertools.product(x, y) ordering. Returns [N, 2]."""
    xs = jnp.linspace(-1.0, 1.0, num_points_sqrt)
    ys = jnp.linspace(-1.0, 1.0, num_points_sqrt)
    gx, gy = jnp.meshgrid(xs, ys, indexing="ij")     # product(x, y): x is the outer loop
    return jnp.stack([gx.reshape(-1), gy.reshape(-1)], axis=-1)


def init_params(key, feat_dims):
    """Deterministic synthetic parameters. Weights stored as [in, out], biases 1-D."""
    F = feat_dims
    shapes = {
        # folding1: Linear(F+2 -> F) split into x-part and grid-part
        "f1_w1x": (F, F), "f1_w1g": (2, F), "f1_b1": (F,),
        "f1_w2": (F, F), "f1_b2": (F,),
        "f1_w3": (F, F), "f1_b3": (F,),
        "f1_w4": (F, 3), "f1_b4": (3,),
        # folding2: Linear(F+3 -> F) split into x-part and points-part
        "f2_w1x": (F, F), "f2_w1p": (3, F), "f2_b1": (F,),
        "f2_w2": (F, F), "f2_b2": (F,),
        "f2_w3": (F, F), "f2_b3": (F,),
        "f2_w4": (F, 3), "f2_b4": (3,),
    }
    params = {}
    keys = jax.random.split(key, len(shapes))
    for k, (name, shp) in zip(keys, shapes.items()):
        fan_in = shp[0] if "w" in name else max(shp[-1], 1)
        scale = 1.0 / np.sqrt(fan_in)
        params[name] = jax.random.uniform(k, shp, jnp.float32, -1.0, 1.0) * scale
    return params


def pack_params(params, feat_dims):
    """Pack the PyTorch-style tensors into the kernel's constant arrays.

    Residual layers folded into the weights (W' = W + I); FxF and 3xF matmul operands
    stored in bf16 (MXU), biases / rank-1 input rows stay f32 (VPU).
    """
    p = params
    F = feat_dims
    I = jnp.eye(F, dtype=jnp.float32)
    wff = jnp.stack([
        (p["f1_w2"] + I).T, (p["f1_w3"] + I).T,
        (p["f2_w2"] + I).T, (p["f2_w3"] + I).T,
    ]).astype(jnp.bfloat16)                                            # [4, F, F]
    bff = jnp.stack([p["f1_b2"], p["f1_b3"],
                     p["f2_b2"], p["f2_b3"]])[:, :, None]              # [4, F, 1]
    winp = jnp.concatenate([p["f1_w1g"], p["f2_w1p"]], axis=0)[:, :, None]   # [5, F, 1]
    wout = jnp.stack([p["f1_w4"].T, p["f2_w4"].T]).astype(jnp.bfloat16)      # [2, 3, F]
    bout = jnp.stack([p["f1_b4"], p["f2_b4"]])[:, :, None]             # [2, 3, 1]
    return wff, bff, winp, wout, bout


def precompute_latent_columns(x_latent, params):
    """Per-batch  x @ W1x + b1  for both folding stages -> [B, 2, F, 1].

    Hoisted out of the per-tile loop (depends only on the batch index); O(B*F^2).
    """
    hi = lax.Precision.HIGHEST
    x = x_latent[:, 0, :]                                              # [B, F]
    c1 = jnp.dot(x, params["f1_w1x"], precision=hi) + params["f1_b1"]
    c2 = jnp.dot(x, params["f2_w1x"], precision=hi) + params["f2_b1"]
    return jnp.stack([c1, c2], axis=1)[..., None]                      # [B, 2, F, 1]


def _pick_point_tile(N, requested, batch_size):
    """Largest multiple of 128 that divides N and is <= requested.

    If batch_size < 2, keep at least 2 point tiles so both v7x TensorCores get work.
    Falls back to a single full-extent tile (tm = N) when N < 128.
    """
    cap = int(requested)
    if batch_size < 2:
        cap = min(cap, max(128, N // 2))
    best = None
    t = 128
    limit = min(cap, N)
    while t <= limit:
        if N % t == 0:
            best = t
        t += 128
    return best if best is not None else N


# ----------------------------- JAX wrapper ----------------------------------

def linear_folding_decoder(x_latent, params, num_points, *, tm=8192):
    """Forward pass of LinearFoldingDecoder (plane grid, no point-encoding, std=None).

    x_latent: [B, 1, F] latent code.
    Returns dict {'reconstruction': [B, 3, N]} matching the PyTorch module.
    """
    B, one, F = x_latent.shape
    assert one == 1
    n_sqrt = int(np.sqrt(num_points))
    N = n_sqrt * n_sqrt

    tm = _pick_point_tile(N, tm, B)
    n_tiles = N // tm
    assert tm * n_tiles == N

    grid_t = build_plane_grid(n_sqrt).T                    # [2, N], points on lanes
    xc = precompute_latent_columns(x_latent, params)       # [B, 2, F, 1]
    wff, bff, winp, wout, bout = pack_params(params, F)

    # Explicit VMEM budget: live f32 [F, tm] temporaries + double-buffered I/O tiles
    # + constant weights, with 2x headroom, floored at 32 MiB and capped for v7x.
    live = 10 * F * tm * 4
    io_buf = 2 * (2 * tm * 4) + 2 * (3 * tm * 4) + 2 * (2 * F * 4)
    consts = 2 * (4 * F * F + 2 * 3 * F) + 4 * ((4 + 5) * F + 6)
    vmem_limit = int(min(max(2 * (live + io_buf + consts), 32 << 20), 56 << 20))

    def const_spec(shape):
        return pl.BlockSpec(shape, lambda j, b: (0,) * len(shape))

    out = pl.pallas_call(
        folding_decoder_kernel,
        out_shape=jax.ShapeDtypeStruct((B, 3, N), jnp.float32),
        grid_spec=pltpu.PrefetchScalarGridSpec(
            num_scalar_prefetch=0,
            grid=(n_tiles, B),                                    # batch on the fast axis
            in_specs=[
                pl.BlockSpec((2, tm), lambda j, b: (0, j)),       # plane-grid^T tile
                pl.BlockSpec((None, 2, F, 1),
                             lambda j, b: (b, 0, 0, 0)),          # hoisted latent columns
                const_spec((4, F, F)),                            # wff (bf16)
                const_spec((4, F, 1)),                            # bff
                const_spec((5, F, 1)),                            # winp
                const_spec((2, 3, F)),                            # wout (bf16)
                const_spec((2, 3, 1)),                            # bout
            ],
            out_specs=pl.BlockSpec((None, 3, tm), lambda j, b: (b, 0, j)),
        ),
        compiler_params=pltpu.CompilerParams(
            dimension_semantics=("parallel", "parallel"),
            vmem_limit_bytes=vmem_limit),
    )(grid_t, xc, wff, bff, winp, wout, bout)

    # TODO(synk): std (VarianceNetwork) branch requires knn/local_cov (data-dependent
    # gather) and the point-encoding grid_map branch is off by default; both are not
    # exercised by the module's default forward (self.std = None, use_point_encoding=False).
    return {"reconstruction": out}


# ----------------------------- references -----------------------------------

def reference_forward(x_latent, params, num_points):
    """Full-precision (float64 numpy) reference of the module's default forward."""
    p = {k: np.asarray(v, np.float64) for k, v in params.items()}
    x = np.asarray(x_latent, np.float64)                   # [B, 1, F]
    B, _, F = x.shape
    n_sqrt = int(np.sqrt(num_points))
    N = n_sqrt * n_sqrt
    grid = np.asarray(build_plane_grid(n_sqrt), np.float64)   # [N, 2]
    xb = np.broadcast_to(x, (B, N, F))
    gb = np.broadcast_to(grid[None], (B, N, 2))
    relu = lambda a: np.maximum(a, 0.0)

    h = relu(xb @ p["f1_w1x"] + gb @ p["f1_w1g"] + p["f1_b1"])
    h = relu(h + h @ p["f1_w2"] + p["f1_b2"])
    h = relu(h + h @ p["f1_w3"] + p["f1_b3"])
    p1 = h @ p["f1_w4"] + p["f1_b4"]

    h = relu(xb @ p["f2_w1x"] + p1 @ p["f2_w1p"] + p["f2_b1"])
    h = relu(h + h @ p["f2_w2"] + p["f2_b2"])
    h = relu(h + h @ p["f2_w3"] + p["f2_b3"])
    p2 = h @ p["f2_w4"] + p["f2_b4"]
    return p2.transpose(0, 2, 1)                           # [B, 3, N]


def reference_forward_matched(x_latent, params, num_points):
    """Pure-JAX reference mirroring the kernel numerics (residual fold W+I, bf16 matmul
    operands, f32 accumulation, rank-1 grid/point terms in f32) for a tight check."""
    p = params
    bf, f32 = jnp.bfloat16, jnp.float32
    B, _, F = x_latent.shape
    n_sqrt = int(np.sqrt(num_points))
    I = jnp.eye(F, dtype=f32)
    grid = build_plane_grid(n_sqrt)                        # [N, 2]
    xc = precompute_latent_columns(x_latent, p)[..., 0]    # [B, 2, F]

    def mm(h, w):
        return jnp.dot(h.astype(bf), w.astype(bf), preferred_element_type=f32)

    g_term = (grid[:, 0:1] * p["f1_w1g"][0][None, :]
              + grid[:, 1:2] * p["f1_w1g"][1][None, :])    # [N, F]
    h = jax.nn.relu(xc[:, 0][:, None, :] + g_term[None])   # [B, N, F]
    h = jax.nn.relu(mm(h, p["f1_w2"] + I) + p["f1_b2"])
    h = jax.nn.relu(mm(h, p["f1_w3"] + I) + p["f1_b3"])
    p1 = mm(h, p["f1_w4"]) + p["f1_b4"]                    # [B, N, 3]

    p_term = (p1[..., 0:1] * p["f2_w1p"][0]
              + p1[..., 1:2] * p["f2_w1p"][1]
              + p1[..., 2:3] * p["f2_w1p"][2])             # [B, N, F]
    h = jax.nn.relu(xc[:, 1][:, None, :] + p_term)
    h = jax.nn.relu(mm(h, p["f2_w2"] + I) + p["f2_b2"])
    h = jax.nn.relu(mm(h, p["f2_w3"] + I) + p["f2_b3"])
    p2 = mm(h, p["f2_w4"]) + p["f2_b4"]
    return p2.transpose(0, 2, 1)                           # [B, 3, N]


# ----------------------------- main -----------------------------------------

if __name__ == "__main__":
    B = 2
    FEAT_DIMS = 32
    NUM_POINTS = 1024           # 32 x 32 plane grid

    key = jax.random.PRNGKey(0)
    k_param, k_x = jax.random.split(key)
    params = init_params(k_param, FEAT_DIMS)
    x_latent = jax.random.normal(k_x, (B, 1, FEAT_DIMS), jnp.float32)

    # Default path (one big tile per batch element) and an explicitly tiled run.
    out_big = linear_folding_decoder(x_latent, params, NUM_POINTS)
    recon_big = jax.block_until_ready(out_big["reconstruction"])
    out_tiled = linear_folding_decoder(x_latent, params, NUM_POINTS, tm=256)
    recon_tiled = jax.block_until_ready(out_tiled["reconstruction"])
    assert recon_big.shape == (B, 3, NUM_POINTS), recon_big.shape
    assert recon_tiled.shape == (B, 3, NUM_POINTS), recon_tiled.shape

    ref_matched = np.asarray(
        jax.block_until_ready(reference_forward_matched(x_latent, params, NUM_POINTS)))
    ref_f64 = reference_forward(x_latent, params, NUM_POINTS)

    for recon in (recon_big, recon_tiled):
        r = np.asarray(recon)
        # Tight check vs. a reference with identical bf16-operand / f32-accum numerics.
        np.testing.assert_allclose(r, ref_matched, rtol=1e-2, atol=1e-2)
        # Loose check vs. the exact (float64) module semantics; the gap is the
        # intentional bf16 quantization of the FxF / 3xF matmul operands.
        np.testing.assert_allclose(r, ref_f64, rtol=1e-1, atol=1e-1)

    print("KERNEL_OK")
</pallas_src>

<mosaic_0001>
module attributes {stable_mosaic.version = 11 : i64} {
  func.func @folding_decoder_kernel(%arg0: i32, %arg1: i32, %arg2: memref<2x1024xf32, #tpu.memory_space<vmem>>, %arg3: memref<1x2x32x1xf32, #tpu.memory_space<vmem>>, %arg4: memref<4x32x32xbf16, #tpu.memory_space<vmem>>, %arg5: memref<4x32x1xf32, #tpu.memory_space<vmem>>, %arg6: memref<5x32x1xf32, #tpu.memory_space<vmem>>, %arg7: memref<2x3x32xbf16, #tpu.memory_space<vmem>>, %arg8: memref<2x3x1xf32, #tpu.memory_space<vmem>>, %arg9: memref<1x3x1024xf32, #tpu.memory_space<vmem>>) attributes {dimension_semantics = [#tpu.dimension_semantics<parallel>, #tpu.dimension_semantics<parallel>], iteration_bounds = array<i64: 1, 2>, scalar_prefetch = 0 : i64, scratch_operands = 0 : i64, tpu.core_type = #tpu.core_type<tc>, window_params = [{transform_indices = @transform_0, window_bounds = array<i64: 2, 1024>}, {transform_indices = @transform_1, window_bounds = array<i64: 1, 2, 32, 1>}, {pipeline_mode = #tpu.pipeline_mode<synchronous>, transform_indices = @transform_2, window_bounds = array<i64: 4, 32, 32>}, {pipeline_mode = #tpu.pipeline_mode<synchronous>, transform_indices = @transform_3, window_bounds = array<i64: 4, 32, 1>}, {pipeline_mode = #tpu.pipeline_mode<synchronous>, transform_indices = @transform_4, window_bounds = array<i64: 5, 32, 1>}, {pipeline_mode = #tpu.pipeline_mode<synchronous>, transform_indices = @transform_5, window_bounds = array<i64: 2, 3, 32>}, {pipeline_mode = #tpu.pipeline_mode<synchronous>, transform_indices = @transform_6, window_bounds = array<i64: 2, 3, 1>}, {transform_indices = @transform_7, window_bounds = array<i64: 1, 3, 1024>}]} {
    %c0 = arith.constant 0 : index
    %c0_0 = arith.constant 0 : index
    %0 = vector.load %arg2[%c0, %c0_0] : memref<2x1024xf32, #tpu.memory_space<vmem>>, vector<2x1024xf32>
    %c0_1 = arith.constant 0 : index
    %c0_2 = arith.constant 0 : index
    %c0_3 = arith.constant 0 : index
    %1 = vector.load %arg6[%c0_1, %c0_2, %c0_3] : memref<5x32x1xf32, #tpu.memory_space<vmem>>, vector<1x32x1xf32>
    %2 = vector.shape_cast %1 : vector<1x32x1xf32> to vector<32x1xf32>
    %3 = vector.extract_strided_slice %0 {offsets = [0, 0], sizes = [1, 1024], strides = [1, 1]} : vector<2x1024xf32> to vector<1x1024xf32>
    %4 = vector.broadcast %2 : vector<32x1xf32> to vector<32x1024xf32>
    %5 = vector.broadcast %3 : vector<1x1024xf32> to vector<32x1024xf32>
    %6 = arith.mulf %4, %5 : vector<32x1024xf32>
    %c1 = arith.constant 1 : index
    %c0_4 = arith.constant 0 : index
    %c0_5 = arith.constant 0 : index
    %7 = vector.load %arg6[%c1, %c0_4, %c0_5] : memref<5x32x1xf32, #tpu.memory_space<vmem>>, vector<1x32x1xf32>
    %8 = vector.shape_cast %7 : vector<1x32x1xf32> to vector<32x1xf32>
    %9 = vector.extract_strided_slice %0 {offsets = [1, 0], sizes = [1, 1024], strides = [1, 1]} : vector<2x1024xf32> to vector<1x1024xf32>
    %10 = vector.broadcast %8 : vector<32x1xf32> to vector<32x1024xf32>
    %11 = vector.broadcast %9 : vector<1x1024xf32> to vector<32x1024xf32>
    %12 = arith.mulf %10, %11 : vector<32x1024xf32>
    %13 = arith.addf %6, %12 : vector<32x1024xf32>
    %c0_6 = arith.constant 0 : index
    %c0_7 = arith.constant 0 : index
    %c0_8 = arith.constant 0 : index
    %c0_9 = arith.constant 0 : index
    %14 = vector.load %arg3[%c0_6, %c0_7, %c0_8, %c0_9] : memref<1x2x32x1xf32, #tpu.memory_space<vmem>>, vector<1x1x32x1xf32>
    %15 = vector.shape_cast %14 : vector<1x1x32x1xf32> to vector<32x1xf32>
    %16 = vector.broadcast %15 : vector<32x1xf32> to vector<32x1024xf32>
    %17 = arith.addf %16, %13 : vector<32x1024xf32>
    %cst = arith.constant 0.000000e+00 : f32
    %18 = vector.broadcast %cst : f32 to vector<32x1024xf32>
    %19 = arith.maximumf %17, %18 : vector<32x1024xf32>
    %c0_10 = arith.constant 0 : index
    %c0_11 = arith.constant 0 : index
    %c0_12 = arith.constant 0 : index
    %20 = vector.load %arg4[%c0_10, %c0_11, %c0_12] : memref<4x32x32xbf16, #tpu.memory_space<vmem>>, vector<1x32x32xbf16>
    %21 = vector.shape_cast %20 : vector<1x32x32xbf16> to vector<32x32xbf16>
    %22 = arith.truncf %19 : vector<32x1024xf32> to vector<32x1024xbf16>
    %cst_13 = arith.constant dense<0.000000e+00> : vector<32x1024xf32>
    %23 = tpu.matmul %21, %22, %cst_13 {dimension_numbers = #tpu.dot_dimension_numbers<[1], [0], [0], [1], [0, 0, 1, 1], [], []>} : vector<32x32xbf16>, vector<32x1024xbf16>, vector<32x1024xf32> -> vector<32x1024xf32>
    %c0_14 = arith.constant 0 : index
    %c0_15 = arith.constant 0 : index
    %c0_16 = arith.constant 0 : index
    %24 = vector.load %arg5[%c0_14, %c0_15, %c0_16] : memref<4x32x1xf32, #tpu.memory_space<vmem>>, vector<1x32x1xf32>
    %25 = vector.shape_cast %24 : vector<1x32x1xf32> to vector<32x1xf32>
    %26 = vector.broadcast %25 : vector<32x1xf32> to vector<32x1024xf32>
    %27 = arith.addf %23, %26 : vector<32x1024xf32>
    %cst_17 = arith.constant 0.000000e+00 : f32
    %28 = vector.broadcast %cst_17 : f32 to vector<32x1024xf32>
    %29 = arith.maximumf %27, %28 : vector<32x1024xf32>
    %c1_18 = arith.constant 1 : index
    %c0_19 = arith.constant 0 : index
    %c0_20 = arith.constant 0 : index
    %30 = vector.load %arg4[%c1_18, %c0_19, %c0_20] : memref<4x32x32xbf16, #tpu.memory_space<vmem>>, vector<1x32x32xbf16>
    %31 = vector.shape_cast %30 : vector<1x32x32xbf16> to vector<32x32xbf16>
    %32 = arith.truncf %29 : vector<32x1024xf32> to vector<32x1024xbf16>
    %cst_21 = arith.constant dense<0.000000e+00> : vector<32x1024xf32>
    %33 = tpu.matmul %31, %32, %cst_21 {dimension_numbers = #tpu.dot_dimension_numbers<[1], [0], [0], [1], [0, 0, 1, 1], [], []>} : vector<32x32xbf16>, vector<32x1024xbf16>, vector<32x1024xf32> -> vector<32x1024xf32>
    %c1_22 = arith.constant 1 : index
    %c0_23 = arith.constant 0 : index
    %c0_24 = arith.constant 0 : index
    %34 = vector.load %arg5[%c1_22, %c0_23, %c0_24] : memref<4x32x1xf32, #tpu.memory_space<vmem>>, vector<1x32x1xf32>
    %35 = vector.shape_cast %34 : vector<1x32x1xf32> to vector<32x1xf32>
    %36 = vector.broadcast %35 : vector<32x1xf32> to vector<32x1024xf32>
    %37 = arith.addf %33, %36 : vector<32x1024xf32>
    %cst_25 = arith.constant 0.000000e+00 : f32
    %38 = vector.broadcast %cst_25 : f32 to vector<32x1024xf32>
    %39 = arith.maximumf %37, %38 : vector<32x1024xf32>
    %c0_26 = arith.constant 0 : index
    %c0_27 = arith.constant 0 : index
    %c0_28 = arith.constant 0 : index
    %40 = vector.load %arg7[%c0_26, %c0_27, %c0_28] : memref<2x3x32xbf16, #tpu.memory_space<vmem>>, vector<1x3x32xbf16>
    %41 = vector.shape_cast %40 : vector<1x3x32xbf16> to vector<3x32xbf16>
    %42 = arith.truncf %39 : vector<32x1024xf32> to vector<32x1024xbf16>
    %cst_29 = arith.constant dense<0.000000e+00> : vector<3x1024xf32>
    %43 = tpu.matmul %41, %42, %cst_29 {dimension_numbers = #tpu.dot_dimension_numbers<[1], [0], [0], [1], [0, 0, 1, 1], [], []>} : vector<3x32xbf16>, vector<32x1024xbf16>, vector<3x1024xf32> -> vector<3x1024xf32>
    %c0_30 = arith.constant 0 : index
    %c0_31 = arith.constant 0 : index
    %c0_32 = arith.constant 0 : index
    %44 = vector.load %arg8[%c0_30, %c0_31, %c0_32] : memref<2x3x1xf32, #tpu.memory_space<vmem>>, vector<1x3x1xf32>
    %45 = vector.shape_cast %44 : vector<1x3x1xf32> to vector<3x1xf32>
    %46 = vector.broadcast %45 : vector<3x1xf32> to vector<3x1024xf32>
    %47 = arith.addf %43, %46 : vector<3x1024xf32>
    %c2 = arith.constant 2 : index
    %c0_33 = arith.constant 0 : index
    %c0_34 = arith.constant 0 : index
    %48 = vector.load %arg6[%c2, %c0_33, %c0_34] : memref<5x32x1xf32, #tpu.memory_space<vmem>>, vector<1x32x1xf32>
    %49 = vector.shape_cast %48 : vector<1x32x1xf32> to vector<32x1xf32>
    %50 = vector.extract_strided_slice %47 {offsets = [0, 0], sizes = [1, 1024], strides = [1, 1]} : vector<3x1024xf32> to vector<1x1024xf32>
    %51 = vector.broadcast %49 : vector<32x1xf32> to vector<32x1024xf32>
    %52 = vector.broadcast %50 : vector<1x1024xf32> to vector<32x1024xf32>
    %53 = arith.mulf %51, %52 : vector<32x1024xf32>
    %c3 = arith.constant 3 : index
    %c0_35 = arith.constant 0 : index
    %c0_36 = arith.constant 0 : index
    %54 = vector.load %arg6[%c3, %c0_35, %c0_36] : memref<5x32x1xf32, #tpu.memory_space<vmem>>, vector<1x32x1xf32>
    %55 = vector.shape_cast %54 : vector<1x32x1xf32> to vector<32x1xf32>
    %56 = vector.extract_strided_slice %47 {offsets = [1, 0], sizes = [1, 1024], strides = [1, 1]} : vector<3x1024xf32> to vector<1x1024xf32>
    %57 = vector.broadcast %55 : vector<32x1xf32> to vector<32x1024xf32>
    %58 = vector.broadcast %56 : vector<1x1024xf32> to vector<32x1024xf32>
    %59 = arith.mulf %57, %58 : vector<32x1024xf32>
    %60 = arith.addf %53, %59 : vector<32x1024xf32>
    %c4 = arith.constant 4 : index
    %c0_37 = arith.constant 0 : index
    %c0_38 = arith.constant 0 : index
    %61 = vector.load %arg6[%c4, %c0_37, %c0_38] : memref<5x32x1xf32, #tpu.memory_space<vmem>>, vector<1x32x1xf32>
    %62 = vector.shape_cast %61 : vector<1x32x1xf32> to vector<32x1xf32>
    %63 = vector.extract_strided_slice %47 {offsets = [2, 0], sizes = [1, 1024], strides = [1, 1]} : vector<3x1024xf32> to vector<1x1024xf32>
    %64 = vector.broadcast %62 : vector<32x1xf32> to vector<32x1024xf32>
    %65 = vector.broadcast %63 : vector<1x1024xf32> to vector<32x1024xf32>
    %66 = arith.mulf %64, %65 : vector<32x1024xf32>
    %67 = arith.addf %60, %66 : vector<32x1024xf32>
    %c0_39 = arith.constant 0 : index
    %c1_40 = arith.constant 1 : index
    %c0_41 = arith.constant 0 : index
    %c0_42 = arith.constant 0 : index
    %68 = vector.load %arg3[%c0_39, %c1_40, %c0_41, %c0_42] : memref<1x2x32x1xf32, #tpu.memory_space<vmem>>, vector<1x1x32x1xf32>
    %69 = vector.shape_cast %68 : vector<1x1x32x1xf32> to vector<32x1xf32>
    %70 = vector.broadcast %69 : vector<32x1xf32> to vector<32x1024xf32>
    %71 = arith.addf %70, %67 : vector<32x1024xf32>
    %cst_43 = arith.constant 0.000000e+00 : f32
    %72 = vector.broadcast %cst_43 : f32 to vector<32x1024xf32>
    %73 = arith.maximumf %71, %72 : vector<32x1024xf32>
    %c2_44 = arith.constant 2 : index
    %c0_45 = arith.constant 0 : index
    %c0_46 = arith.constant 0 : index
    %74 = vector.load %arg4[%c2_44, %c0_45, %c0_46] : memref<4x32x32xbf16, #tpu.memory_space<vmem>>, vector<1x32x32xbf16>
    %75 = vector.shape_cast %74 : vector<1x32x32xbf16> to vector<32x32xbf16>
    %76 = arith.truncf %73 : vector<32x1024xf32> to vector<32x1024xbf16>
    %cst_47 = arith.constant dense<0.000000e+00> : vector<32x1024xf32>
    %77 = tpu.matmul %75, %76, %cst_47 {dimension_numbers = #tpu.dot_dimension_numbers<[1], [0], [0], [1], [0, 0, 1, 1], [], []>} : vector<32x32xbf16>, vector<32x1024xbf16>, vector<32x1024xf32> -> vector<32x1024xf32>
    %c2_48 = arith.constant 2 : index
    %c0_49 = arith.constant 0 : index
    %c0_50 = arith.constant 0 : index
    %78 = vector.load %arg5[%c2_48, %c0_49, %c0_50] : memref<4x32x1xf32, #tpu.memory_space<vmem>>, vector<1x32x1xf32>
    %79 = vector.shape_cast %78 : vector<1x32x1xf32> to vector<32x1xf32>
    %80 = vector.broadcast %79 : vector<32x1xf32> to vector<32x1024xf32>
    %81 = arith.addf %77, %80 : vector<32x1024xf32>
    %cst_51 = arith.constant 0.000000e+00 : f32
    %82 = vector.broadcast %cst_51 : f32 to vector<32x1024xf32>
    %83 = arith.maximumf %81, %82 : vector<32x1024xf32>
    %c3_52 = arith.constant 3 : index
    %c0_53 = arith.constant 0 : index
    %c0_54 = arith.constant 0 : index
    %84 = vector.load %arg4[%c3_52, %c0_53, %c0_54] : memref<4x32x32xbf16, #tpu.memory_space<vmem>>, vector<1x32x32xbf16>
    %85 = vector.shape_cast %84 : vector<1x32x32xbf16> to vector<32x32xbf16>
    %86 = arith.truncf %83 : vector<32x1024xf32> to vector<32x1024xbf16>
    %cst_55 = arith.constant dense<0.000000e+00> : vector<32x1024xf32>
    %87 = tpu.matmul %85, %86, %cst_55 {dimension_numbers = #tpu.dot_dimension_numbers<[1], [0], [0], [1], [0, 0, 1, 1], [], []>} : vector<32x32xbf16>, vector<32x1024xbf16>, vector<32x1024xf32> -> vector<32x1024xf32>
    %c3_56 = arith.constant 3 : index
    %c0_57 = arith.constant 0 : index
    %c0_58 = arith.constant 0 : index
    %88 = vector.load %arg5[%c3_56, %c0_57, %c0_58] : memref<4x32x1xf32, #tpu.memory_space<vmem>>, vector<1x32x1xf32>
    %89 = vector.shape_cast %88 : vector<1x32x1xf32> to vector<32x1xf32>
    %90 = vector.broadcast %89 : vector<32x1xf32> to vector<32x1024xf32>
    %91 = arith.addf %87, %90 : vector<32x1024xf32>
    %cst_59 = arith.constant 0.000000e+00 : f32
    %92 = vector.broadcast %cst_59 : f32 to vector<32x1024xf32>
    %93 = arith.maximumf %91, %92 : vector<32x1024xf32>
    %c1_60 = arith.constant 1 : index
    %c0_61 = arith.constant 0 : index
    %c0_62 = arith.constant 0 : index
    %94 = vector.load %arg7[%c1_60, %c0_61, %c0_62] : memref<2x3x32xbf16, #tpu.memory_space<vmem>>, vector<1x3x32xbf16>
    %95 = vector.shape_cast %94 : vector<1x3x32xbf16> to vector<3x32xbf16>
    %96 = arith.truncf %93 : vector<32x1024xf32> to vector<32x1024xbf16>
    %cst_63 = arith.constant dense<0.000000e+00> : vector<3x1024xf32>
    %97 = tpu.matmul %95, %96, %cst_63 {dimension_numbers = #tpu.dot_dimension_numbers<[1], [0], [0], [1], [0, 0, 1, 1], [], []>} : vector<3x32xbf16>, vector<32x1024xbf16>, vector<3x1024xf32> -> vector<3x1024xf32>
    %c1_64 = arith.constant 1 : index
    %c0_65 = arith.constant 0 : index
    %c0_66 = arith.constant 0 : index
    %98 = vector.load %arg8[%c1_64, %c0_65, %c0_66] : memref<2x3x1xf32, #tpu.memory_space<vmem>>, vector<1x3x1xf32>
    %99 = vector.shape_cast %98 : vector<1x3x1xf32> to vector<3x1xf32>
    %100 = vector.broadcast %99 : vector<3x1xf32> to vector<3x1024xf32>
    %101 = arith.addf %97, %100 : vector<3x1024xf32>
    %c0_67 = arith.constant 0 : index
    %c0_68 = arith.constant 0 : index
    %c0_69 = arith.constant 0 : index
    %102 = vector.load %arg9[%c0_67, %c0_68, %c0_69] : memref<1x3x1024xf32, #tpu.memory_space<vmem>>, vector<1x3x1024xf32>
    %103 = vector.shape_cast %102 : vector<1x3x1024xf32> to vector<3x1024xf32>
    %104 = vector.shape_cast %101 : vector<3x1024xf32> to vector<1x3x1024xf32>
    tpu.vector_store %arg9[%c0_67, %c0_68, %c0_69], %104 {strides = array<i32>} : memref<1x3x1024xf32, #tpu.memory_space<vmem>>, vector<1x3x1024xf32>,
    return
  }
  func.func @transform_0(%arg0: i32, %arg1: i32) -> (i32, i32) {
    %c0_i32 = arith.constant 0 : i32
    %c0_i32_0 = arith.constant 0 : i32
    return %c0_i32, %arg0 : i32, i32
  }
  func.func @transform_1(%arg0: i32, %arg1: i32) -> (i32, i32, i32, i32) {
    %c0_i32 = arith.constant 0 : i32
    %c0_i32_0 = arith.constant 0 : i32
    %c0_i32_1 = arith.constant 0 : i32
    %c0_i32_2 = arith.constant 0 : i32
    return %arg1, %c0_i32, %c0_i32_0, %c0_i32_1 : i32, i32, i32, i32
  }
  func.func @transform_2(%arg0: i32, %arg1: i32) -> (i32, i32, i32) {
    %c0_i32 = arith.constant 0 : i32
    %c0_i32_0 = arith.constant 0 : i32
    %c0_i32_1 = arith.constant 0 : i32
    %c0_i32_2 = arith.constant 0 : i32
    return %c0_i32, %c0_i32_0, %c0_i32_1 : i32, i32, i32
  }
  func.func @transform_3(%arg0: i32, %arg1: i32) -> (i32, i32, i32) {
    %c0_i32 = arith.constant 0 : i32
    %c0_i32_0 = arith.constant 0 : i32
    %c0_i32_1 = arith.constant 0 : i32
    %c0_i32_2 = arith.constant 0 : i32
    return %c0_i32, %c0_i32_0, %c0_i32_1 : i32, i32, i32
  }
  func.func @transform_4(%arg0: i32, %arg1: i32) -> (i32, i32, i32) {
    %c0_i32 = arith.constant 0 : i32
    %c0_i32_0 = arith.constant 0 : i32
    %c0_i32_1 = arith.constant 0 : i32
    %c0_i32_2 = arith.constant 0 : i32
    return %c0_i32, %c0_i32_0, %c0_i32_1 : i32, i32, i32
  }
  func.func @transform_5(%arg0: i32, %arg1: i32) -> (i32, i32, i32) {
    %c0_i32 = arith.constant 0 : i32
    %c0_i32_0 = arith.constant 0 : i32
    %c0_i32_1 = arith.constant 0 : i32
    %c0_i32_2 = arith.constant 0 : i32
    return %c0_i32, %c0_i32_0, %c0_i32_1 : i32, i32, i32
  }
  func.func @transform_6(%arg0: i32, %arg1: i32) -> (i32, i32, i32) {
    %c0_i32 = arith.constant 0 : i32
    %c0_i32_0 = arith.constant 0 : i32
    %c0_i32_1 = arith.constant 0 : i32
    %c0_i32_2 = arith.constant 0 : i32
    return %c0_i32, %c0_i32_0, %c0_i32_1 : i32, i32, i32
  }
  func.func @transform_7(%arg0: i32, %arg1: i32) -> (i32, i32, i32) {
    %c0_i32 = arith.constant 0 : i32
    %c0_i32_0 = arith.constant 0 : i32
    return %arg1, %c0_i32, %arg0 : i32, i32, i32
  }
}

</mosaic_0001>

<bundles_post_ra>
// kernel: tpu_custom_call.1
= control target key start
LH: loop header
LB: loop body
LE: loop exit
PB: predicated region body
PF: predicated region fallthrough
CT: control target
= control target key end

     0   :  { %s3055_s24 = smov 0   ;;  %s3057_s25 = smov 0   ;;  %s4174_s0 = inlined_call_operand.vmem [shape: f32[2,1024], index: 0, kind: input, shape index: {}]   ;;  %s4175_s1 = inlined_call_operand.vmem [shape: f32[2,2,32,1], index: 1, kind: input, shape index: {}]   ;;  %s4176_s2 = inlined_call_operand.vmem [shape: bf16[4,32,32], index: 2, kind: input, shape index: {}]   ;;  %s4177_s3 = inlined_call_operand.vmem [shape: f32[4,32,1], index: 3, kind: input, shape index: {}]   ;;  %s4178_s4 = inlined_call_operand.vmem [shape: f32[5,32,1], index: 4, kind: input, shape index: {}]   ;;  %s4179_s5 = inlined_call_operand.vmem [shape: bf16[2,3,32], index: 5, kind: input, shape index: {}]   ;;  %s4180_s6 = inlined_call_operand.vmem [shape: f32[2,3,1], index: 6, kind: input, shape index: {}]   ;;  %s4181_s7 = inlined_call_operand.vmem [shape: f32[2,3,1024], index: 7, kind: output, shape index: {}]  }
   0x1   :  { %s3059_s26 = smov 0  }
   0x2 LB: > { %s26_s27 = sadd.s32 1, %s3008_s25  ;;  %p2852_p0 = scmp.ge.s32.totalorder %s3012_s26, 1  ;;  %s3012_s26 = sphi %s3059_s26, %s17_s26   ;;  %s3008_s25 = sphi %s3057_s25, %s4222_s25   ;;  %s3004_s24 = sphi %s3055_s24, %s4221_s24  }
   0x3   : > { %p27_p1 = scmp.ge.s32.totalorder %s26_s27, 2  ;;  %p262_p2 = scmp.lt.s32.totalorder %s3012_s26, 3 }
   0x5   : > { %s4224_s27 = smov (%p27_p1, %s26_s27), 0  ;;  %p263_p3 = pnand %p2852_p0, %p262_p2 }
   0x7   : > { %266 = sbr.rel (%p263_p3) target bundleno = 1526 (0x5f6), region = 48 }
   0xc   : > { %v2859_v0 = vld [vmem:[%s4178_s4 + $0x30] sm:$0xff]  ;;  %v4182_v2 = vmov 0   ;;  %p309_p4 = scmp.lt.s32.totalorder %s3004_s24, 1  ;;  %v2860_v3 = vld [vmem:[%s4178_s4 + $0x38] sm:$0xff]  ;;  %v328_v5 = vld [vmem:[%s4178_s4 + $0x8] sm:$0xff]  ;;  %v353_v47 = vlaneseq  ;;  %vm760_vm0 = vcmask 261120  }
   0xd   : > { %v329_v1 = vld [vmem:[%s4178_s4 + $0x10] sm:$0xff]  ;;  %2981 = vset.pattern.permute.xlu1 %v4182_v2  ;;  %2980 = vset.pattern.permute.xlu0 %v4182_v2  ;;  %v330_v4 = vld [vmem:[%s4178_s4 + $0x18] sm:$0xff]  ;;  %v327_v6 = vld [vmem:[%s4178_s4] sm:$0xff] }
   0xe   : > { %474 = vperm.xlu1 %2981, %v2859_v0   ;;  %343 = vperm.xlu0 %2980, %v329_v1   ;;  %s4226_s24 = smov (!%p309_p4, %s3004_s24), 1  ;;  %v2858_v7 = vld [vmem:[%s4178_s4 + $0x28] sm:$0xff]  ;;  %v2857_v8 = vld [vmem:[%s4178_s4 + $0x20] sm:$0xff]  ;;  %v729_v13 = vld [vmem:[%s4177_s3 + $0x18] sm:$0xff]  ;;  %v354_v48 = vshrl.u32 %v353_v47, 7 }
   0xf   : > { %799 = vmatprep.mubr.bf16.mxu0 %v4182_v2  ;;  %852 = vmatprep.mubr.bf16.mxu1 %v4182_v2  ;;  %s2953_s17 = sshll.u32 %s4226_s24, 6  ;;  %v728_v14 = vld [vmem:[%s4177_s3 + $0x10] sm:$0xff]  ;;  %v727_v15 = vld [vmem:[%s4177_s3 + $0x8] sm:$0xff]  ;;  %v726_v16 = vld [vmem:[%s4177_s3] sm:$0xff]  ;;  %s2954_s16 = sshll.u32 %s4226_s24, 5 }
  0x10   : > { %s3107_s28 = scalar_lea.vmem %s4175_s1, %s2953_s17  ;;  %v2878_v17 = vld [vmem:[%s4177_s3 + $0x38] sm:$0xff]  ;;  %v2877_v18 = vld [vmem:[%s4177_s3 + $0x30] sm:$0xff]  ;;  %v2876_v19 = vld [vmem:[%s4177_s3 + $0x28] sm:$0xff]  ;;  %v3207_v49 = vsub.s32 2, %v354_v48  ;;  %v488_v50 = vsub.s32 3, %v354_v48  ;;  %v367_v51 = vsub.s32 6, %v354_v48  ;;  %s322_s19 = scalar_lea.vmem %s4181_s7, %s2954_s16 }
  0x11   : > { %v621_v9 = vld [vmem:[%s3107_s28 + $0x18] sm:$0xff]  ;;  %v620_v10 = vld [vmem:[%s3107_s28 + $0x10] sm:$0xff]  ;;  %v619_v11 = vld [vmem:[%s3107_s28 + $0x8] sm:$0xff]  ;;  %v496_v52 = vsub.s32 7, %v354_v48  ;;  %v3212_v54 = vsub.s32 0, %v354_v48  ;;  %v3214_v55 = vsub.s32 1, %v354_v48 }
  0x12   : > { %479 = vperm.xlu1 %2981, %v2860_v3   ;;  %348 = vperm.xlu0 %2980, %v330_v4   ;;  %v618_v12 = vld [vmem:[%s3107_s28] sm:$0xff]  ;;  %v2895_v21 = vld [vmem:[%s4178_s4 + $0x50] sm:$0xff]  ;;  %v2896_v24 = vld [vmem:[%s4178_s4 + $0x58] sm:$0xff]  ;;  %4187 = vst [vmem:[#allocation2_spill] sm:$0xff] %v3207_v49  ;;  %v363_v56 = vsub.s32 4, %v354_v48  ;;  %v492_v57 = vsub.s32 5, %v354_v48 }
  0x13   : > { %v2875_v20 = vld [vmem:[%s4177_s3 + $0x20] sm:$0xff]  ;;  %v2899_v23 = vld [vmem:[%s4178_s4 + $0x70] sm:$0xff]  ;;  %v2900_v26 = vld [vmem:[%s4178_s4 + $0x78] sm:$0xff] }
  0x14   : > { %v1334_v22 = vld [vmem:[%s4180_s6] sm:$0x7]  ;;  %v2903_v25 = vld [vmem:[%s4178_s4 + $0x90] sm:$0xff]  ;;  %v2904_v28 = vld [vmem:[%s4178_s4 + $0x98] sm:$0xff] }
  0x15   : > { %v2893_v27 = vld [vmem:[%s4178_s4 + $0x40] sm:$0xff]  ;;  %v2894_v30 = vld [vmem:[%s4178_s4 + $0x48] sm:$0xff]  ;;  %v2907_v33 = vld [vmem:[%s3107_s28 + $0x30] sm:$0xff] }
  0x16   : > { %338 = vperm.xlu1 %2981, %v328_v5   ;;  %333 = vperm.xlu0 %2980, %v327_v6   ;;  %v2897_v29 = vld [vmem:[%s4178_s4 + $0x60] sm:$0xff]  ;;  %v2898_v32 = vld [vmem:[%s4178_s4 + $0x68] sm:$0xff]  ;;  %v2908_v36 = vld [vmem:[%s3107_s28 + $0x38] sm:$0xff] }
  0x17   : > { %v2901_v31 = vld [vmem:[%s4178_s4 + $0x80] sm:$0xff]  ;;  %v2902_v34 = vld [vmem:[%s4178_s4 + $0x88] sm:$0xff]  ;;  %v2915_v37 = vld [vmem:[%s4177_s3 + $0x50] sm:$0xff] }
  0x18   : > { %v2905_v35 = vld [vmem:[%s3107_s28 + $0x20] sm:$0xff]  ;;  %v2906_v38 = vld [vmem:[%s3107_s28 + $0x28] sm:$0xff]  ;;  %v2916_v40 = vld [vmem:[%s4177_s3 + $0x58] sm:$0xff] }
  0x19   : > { %v2913_v39 = vld [vmem:[%s4177_s3 + $0x40] sm:$0xff]  ;;  %v2933_v41 = vld [vmem:[%s4177_s3 + $0x70] sm:$0xff]  ;;  %v2914_v42 = vld [vmem:[%s4177_s3 + $0x48] sm:$0xff] }
  0x1a   : > { %469 = vperm.xlu1 %2981, %v2858_v7   ;;  %464 = vperm.xlu0 %2980, %v2857_v8   ;;  %v2931_v43 = vld [vmem:[%s4177_s3 + $0x60] sm:$0xff]  ;;  %v2934_v44 = vld [vmem:[%s4177_s3 + $0x78] sm:$0xff]  ;;  %v2932_v46 = vld [vmem:[%s4177_s3 + $0x68] sm:$0xff] }
  0x1b   : > { %v2946_v45 = vld [vmem:[%s4180_s6 + $0x4] sm:$0x7]  ;;  %v326_v58 = vld [vmem:[%s4174_s0 + $0x8] sm:$0xff] }
  0x1c   : > { %v325_v53 = vld [vmem:[%s4174_s0] sm:$0xff]  ;;  %v376_v4 = vrot.slane %v326_v58, %v3207_v49  ;;  %v505_v5 = vrot.slane %v326_v58, %v488_v50  ;;  %v384_v6 = vrot.slane %v326_v58, %v367_v51  ;;  %v513_v7 = vrot.slane %v326_v58, %v496_v52 }
  0x1d   : > { %v360_v59 = vrot.slane %v325_v53, %v3207_v49  ;;  %v489_v60 = vrot.slane %v325_v53, %v488_v50  ;;  %v368_v61 = vrot.slane %v325_v53, %v367_v51  ;;  %v497_v62 = vrot.slane %v325_v53, %v496_v52 }
  0x1e   : > { %639 = vperm.xlu1 %2981, %v621_v9   ;;  %634 = vperm.xlu0 %2980, %v620_v10   ;;  %v356_v63 = vrot.slane %v325_v53, %v3212_v54  ;;  %v485_v0 = vrot.slane %v325_v53, %v3214_v55  ;;  %v364_v1 = vrot.slane %v325_v53, %v363_v56 }
  0x1f   : > { %v493_v3 = vrot.slane %v325_v53, %v492_v57  ;;  %v380_v8 = vrot.slane %v326_v58, %v363_v56  ;;  %v509_v9 = vrot.slane %v326_v58, %v492_v57  ;;  %v372_v10 = vrot.slane %v326_v58, %v3212_v54 }
  0x22   : > { %629 = vperm.xlu1 %2981, %v619_v11   ;;  %624 = vperm.xlu0 %2980, %v618_v12   ;;  %v501_v11 = vrot.slane %v326_v58, %v3214_v55  ;;  %v400_v12 = vrot.slane %v360_v59, %v3212_v54 }
  0x26   : > { %747 = vperm.xlu1 %2981, %v729_v13   ;;  %742 = vperm.xlu0 %2980, %v728_v14   ;;  %v3227_v13 = vrot.slane %v489_v60, %v3214_v55  ;;  %v408_v14 = vrot.slane %v368_v61, %v3212_v54 }
  0x2a   : > { %737 = vperm.xlu1 %2981, %v727_v15   ;;  %732 = vperm.xlu0 %2980, %v726_v16   ;;  %v3231_v15 = vrot.slane %v497_v62, %v3214_v55  ;;  %v396_v16 = vrot.slane %v356_v63, %v3212_v54 }
  0x2e   : > { %1054 = vperm.xlu1 %2981, %v2878_v17   ;;  %1049 = vperm.xlu0 %2980, %v2877_v18   ;;  %v3235_v17 = vrot.slane %v485_v0, %v3214_v55  ;;  %v404_v18 = vrot.slane %v364_v1, %v3212_v54 }
  0x32   : > { %1044 = vperm.xlu1 %2981, %v2876_v19   ;;  %1039 = vperm.xlu0 %2980, %v2875_v20   ;;  %v3239_v19 = vrot.slane %v493_v3, %v3214_v55  ;;  %v3242_v20 = vrot.slane %v376_v4, %v3212_v54 }
  0x36   : > { %1524 = vperm.xlu1 %2981, %v2895_v21   ;;  %1337 = vperm.xlu0 %2980, %v1334_v22   ;;  %v3245_v21 = vrot.slane %v505_v5, %v3214_v55  ;;  %v3248_v22 = vrot.slane %v384_v6, %v3212_v54 }
  0x3a   : > { %1613 = vperm.xlu1 %2981, %v2899_v23   ;;  %1529 = vperm.xlu0 %2980, %v2896_v24   ;;  %v3251_v23 = vrot.slane %v513_v7, %v3214_v55 }
  0x3e   : > { %1734 = vperm.xlu1 %2981, %v2903_v25   ;;  %1618 = vperm.xlu0 %2980, %v2900_v26   ;;  %v3256_v26 = vrot.slane %v372_v10, %v3212_v54 }
  0x42   : > { %1514 = vperm.xlu1 %2981, %v2893_v27   ;;  %1739 = vperm.xlu0 %2980, %v2904_v28   ;;  %v3259_v27 = vrot.slane %v501_v11, %v3214_v55  ;;  %v3262_v28 = vrot.slane %v380_v8, %v3212_v54 }
  0x46   : > { %1603 = vperm.xlu1 %2981, %v2897_v29   ;;  %1519 = vperm.xlu0 %2980, %v2894_v30   ;;  %v3265_v29 = vrot.slane %v509_v9, %v3214_v55 }
  0x4a   : > { %1724 = vperm.xlu1 %2981, %v2901_v31   ;;  %1608 = vperm.xlu0 %2980, %v2898_v32  }
  0x4e   : > { %1855 = vperm.xlu1 %2981, %v2907_v33   ;;  %1729 = vperm.xlu0 %2980, %v2902_v34  }
  0x52   : > { %1845 = vperm.xlu1 %2981, %v2905_v35   ;;  %1860 = vperm.xlu0 %2980, %v2908_v36  }
  0x56   : > { %1965 = vperm.xlu1 %2981, %v2915_v37   ;;  %1850 = vperm.xlu0 %2980, %v2906_v38  }
  0x5a   : > { %1955 = vperm.xlu1 %2981, %v2913_v39   ;;  %1970 = vperm.xlu0 %2980, %v2916_v40  }
  0x5e   : > { %2271 = vperm.xlu1 %2981, %v2933_v41   ;;  %1960 = vperm.xlu0 %2980, %v2914_v42  }
  0x62   : > { %2261 = vperm.xlu1 %2981, %v2931_v43   ;;  %2276 = vperm.xlu0 %2980, %v2934_v44  }
  0x66   : > { %2561 = vperm.xlu1 %2981, %v2946_v45   ;;  %2266 = vperm.xlu0 %2980, %v2932_v46  }
  0x89   : > { %v3253_v24 = vpop.permute.xlu1 %474  ;;  %v344_v25 = vpop.permute.xlu0 %343 }
  0x8a   : > { %v442_v30 = vmul.f32 %v400_v12, %v344_v25  ;;  %v571_v31 = vmul.f32 %v3227_v13, %v3253_v24  ;;  %v444_v32 = vmul.f32 %v408_v14, %v344_v25  ;;  %v573_v33 = vmul.f32 %v3231_v15, %v3253_v24 }
  0x8b   : > { %v441_v34 = vmul.f32 %v396_v16, %v344_v25  ;;  %v570_v35 = vmul.f32 %v3235_v17, %v3253_v24  ;;  %v443_v36 = vmul.f32 %v404_v18, %v344_v25  ;;  %v572_v37 = vmul.f32 %v3239_v19, %v3253_v24 }
  0x8c   : > { %v3275_v38 = vadd.f32 %v571_v31, %v442_v30  ;;  %v3277_v39 = vadd.f32 %v573_v33, %v444_v32  ;;  %v446_v40 = vmul.f32 %v3242_v20, %v344_v25  ;;  %v575_v41 = vmul.f32 %v3245_v21, %v3253_v24 }
  0x8d   : > { %v3282_v42 = vpop.permute.xlu1 %479  ;;  %v3284_v43 = vpop.permute.xlu0 %348  ;;  %v602_v44 = vadd.f32 %v570_v35, %v441_v34  ;;  %v3286_v45 = vadd.f32 %v572_v37, %v443_v36  ;;  %v448_v46 = vmul.f32 %v3248_v22, %v344_v25  ;;  %v577_v47 = vmul.f32 %v3251_v23, %v3253_v24 }
  0x8e   : > { %v450_v48 = vmul.f32 %v400_v12, %v3284_v43  ;;  %v579_v50 = vmul.f32 %v3227_v13, %v3282_v42  ;;  %v452_v51 = vmul.f32 %v408_v14, %v3284_v43  ;;  %v581_v52 = vmul.f32 %v3231_v15, %v3282_v42 }
  0x8f   : > { %v449_v53 = vmul.f32 %v396_v16, %v3284_v43  ;;  %v578_v56 = vmul.f32 %v3235_v17, %v3282_v42  ;;  %v451_v57 = vmul.f32 %v404_v18, %v3284_v43  ;;  %v580_v58 = vmul.f32 %v3239_v19, %v3282_v42 }
  0x90   : > { %v611_v59 = vadd.f32 %v579_v50, %v450_v48  ;;  %v613_v60 = vadd.f32 %v581_v52, %v452_v51  ;;  %v454_v61 = vmul.f32 %v3242_v20, %v3284_v43  ;;  %v583_v62 = vmul.f32 %v3245_v21, %v3282_v42 }
  0x91   : > { %v3307_v63 = vpop.permute.xlu1 %338  ;;  %v3309_v0 = vpop.permute.xlu0 %333  ;;  %v610_v1 = vadd.f32 %v578_v56, %v449_v53  ;;  %v612_v3 = vadd.f32 %v580_v58, %v451_v57  ;;  %v3311_v4 = vadd.f32 %v575_v41, %v446_v40  ;;  %v3315_v5 = vmul.f32 %v3248_v22, %v3284_v43 }
  0x92   : > { %v426_v6 = vmul.f32 %v400_v12, %v3309_v0  ;;  %v434_v7 = vmul.f32 %v400_v12, %v3307_v63  ;;  %v428_v8 = vmul.f32 %v408_v14, %v3309_v0  ;;  %v436_v9 = vmul.f32 %v408_v14, %v3307_v63 }
  0x93   : > { %v425_v10 = vmul.f32 %v396_v16, %v3309_v0  ;;  %v433_v11 = vmul.f32 %v396_v16, %v3307_v63  ;;  %v427_v30 = vmul.f32 %v404_v18, %v3309_v0  ;;  %v435_v31 = vmul.f32 %v404_v18, %v3307_v63 }
  0x94   : > { %v3325_v32 = vadd.f32 %v583_v62, %v454_v61  ;;  %v3329_v33 = vmul.f32 %v3251_v23, %v3282_v42  ;;  %v3331_v34 = vadd.f32 %v577_v47, %v448_v46  ;;  %v3334_v12 = vmul.f32 %v3256_v26, %v344_v25 }
  0x95   : > { %v3336_v14 = vpop.permute.xlu1 %469  ;;  %v3338_v35 = vpop.permute.xlu0 %464  ;;  %v3342_v16 = vmul.f32 %v3256_v26, %v3284_v43  ;;  %v3346_v18 = vmul.f32 %v3259_v27, %v3253_v24  ;;  %v3350_v36 = vmul.f32 %v3259_v27, %v3282_v42  ;;  %v3353_v37 = vmul.f32 %v3262_v28, %v344_v25 }
  0x96   : > { %v555_v40 = vmul.f32 %v3227_v13, %v3338_v35  ;;  %v563_v41 = vmul.f32 %v3227_v13, %v3336_v14  ;;  %v557_v46 = vmul.f32 %v3231_v15, %v3338_v35  ;;  %v565_v47 = vmul.f32 %v3231_v15, %v3336_v14 }
  0x97   : > { %v554_v48 = vmul.f32 %v3235_v17, %v3338_v35  ;;  %v562_v50 = vmul.f32 %v3235_v17, %v3336_v14  ;;  %v556_v25 = vmul.f32 %v3239_v19, %v3338_v35  ;;  %v564_v51 = vmul.f32 %v3239_v19, %v3336_v14 }
  0x98   : > { %v587_v52 = vadd.f32 %v555_v40, %v426_v6  ;;  %v595_v13 = vadd.f32 %v563_v41, %v434_v7  ;;  %v589_v53 = vadd.f32 %v557_v46, %v428_v8  ;;  %v597_v56 = vadd.f32 %v565_v47, %v436_v9 }
  0x99   : > { %v3371_v57 = vpop.permute.xlu1 %639  ;;  %v3373_v58 = vpop.permute.xlu0 %634  ;;  %v586_v15 = vadd.f32 %v554_v48, %v425_v10  ;;  %v594_v61 = vadd.f32 %v562_v50, %v433_v11  ;;  %v588_v62 = vadd.f32 %v556_v25, %v427_v30  ;;  %v596_v2 = vadd.f32 %v564_v51, %v435_v31 }
  0x9a   : > { %v659_v17 = vadd.f32 %v3373_v58, %v3275_v38  ;;  %v667_v49 = vadd.f32 %v3371_v57, %v611_v59  ;;  %v661_v19 = vadd.f32 %v3373_v58, %v3277_v39  ;;  %v669_v6 = vadd.f32 %v3371_v57, %v613_v60 }
  0x9b   : > { %v658_v7 = vadd.f32 %v3373_v58, %v602_v44  ;;  %v666_v8 = vadd.f32 %v3371_v57, %v610_v1  ;;  %v660_v9 = vadd.f32 %v3373_v58, %v3286_v45  ;;  %v668_v10 = vadd.f32 %v3371_v57, %v612_v3 }
  0x9c   : > { %v691_v11 = vmax.f32 %v659_v17, 0.0  ;;  %v699_v30 = vmax.f32 %v667_v49, 0.0  ;;  %v693_v31 = vmax.f32 %v661_v19, 0.0  ;;  %v701_v38 = vmax.f32 %v669_v6, 0.0 }
  0x9d   : > { %v3386_v40 = vpop.permute.xlu1 %629  ;;  %v3388_v59 = vpop.permute.xlu0 %624  ;;  %v690_v39 = vmax.f32 %v658_v7, 0.0  ;;  %v698_v41 = vmax.f32 %v666_v8, 0.0  ;;  %v692_v60 = vmax.f32 %v660_v9, 0.0  ;;  %v700_v46 = vmax.f32 %v668_v10, 0.0 }
  0x9e   : > { %v719_v44 = vpack.c.bf16 %v699_v30, %v691_v11  ;;  %v721_v47 = vpack.c.bf16 %v701_v38, %v693_v31  ;;  %v643_v1 = vadd.f32 %v3388_v59, %v587_v52  ;;  %v651_v45 = vadd.f32 %v3386_v40, %v595_v13 }
  0x9f   : > { %v718_v3 = vpack.c.bf16 %v698_v41, %v690_v39  ;;  %v720_v48 = vpack.c.bf16 %v700_v46, %v692_v60  ;;  %v645_v49 = vadd.f32 %v3388_v59, %v589_v53  ;;  %v653_v50 = vadd.f32 %v3386_v40, %v597_v56 }
  0xa0   : > { %779 = vmatprep.subr.bf16.mxu0 %v719_v44  ;;  %832 = vmatprep.subr.bf16.mxu1 %v721_v47  ;;  %v675_v25 = vmax.f32 %v643_v1, 0.0  ;;  %v683_v51 = vmax.f32 %v651_v45, 0.0  ;;  %v642_v17 = vadd.f32 %v3388_v59, %v586_v15  ;;  %v650_v19 = vadd.f32 %v3386_v40, %v594_v61 }
  0xa1   : > { %780 = vmatpush1.bf16.msra.mxu0 %v718_v3  ;;  %833 = vmatpush1.bf16.msra.mxu1 %v720_v48  ;;  %v677_v52 = vmax.f32 %v645_v49, 0.0  ;;  %v685_v6 = vmax.f32 %v653_v50, 0.0  ;;  %v644_v13 = vadd.f32 %v3388_v59, %v588_v62  ;;  %v652_v7 = vadd.f32 %v3386_v40, %v596_v2 }
  0xa2   : > { %v711_v8 = vpack.c.bf16 %v683_v51, %v675_v25  ;;  %v674_v53 = vmax.f32 %v642_v17, 0.0  ;;  %v682_v9 = vmax.f32 %v650_v19, 0.0  ;;  %v663_v56 = vadd.f32 %v3373_v58, %v3311_v4  ;;  %v3409_v4 = vld [vmem:[%s4176_s2] sm:$0xff]  }
  0xa3   : > { %v713_v10 = vpack.c.bf16 %v685_v6, %v677_v52  ;;  %v676_v11 = vmax.f32 %v644_v13, 0.0  ;;  %v684_v30 = vmax.f32 %v652_v7, 0.0  ;;  %v671_v15 = vadd.f32 %v3371_v57, %v3325_v32 }
  0xa4   : > { %781 = vmatprep.subr.bf16.mxu0 %v711_v8  ;;  %v710_v61 = vpack.c.bf16 %v682_v9, %v674_v53  ;;  %v695_v31 = vmax.f32 %v663_v56, 0.0  ;;  %v617_v62 = vadd.f32 %v3329_v33, %v3315_v5  ;;  %v665_v2 = vadd.f32 %v3373_v58, %v3331_v34 }
  0xa5   : > { %834 = vmatprep.subr.bf16.mxu1 %v713_v10  ;;  %v712_v38 = vpack.c.bf16 %v684_v30, %v676_v11  ;;  %v703_v39 = vmax.f32 %v671_v15, 0.0  ;;  %v606_v32 = vadd.f32 %v3346_v18, %v3334_v12  ;;  %v614_v41 = vadd.f32 %v3350_v36, %v3342_v16 }
  0xa6   : > { %782 = vmatpush1.bf16.msra.mxu0 %v710_v61  ;;  %v673_v5 = vadd.f32 %v3371_v57, %v617_v62  ;;  %v697_v33 = vmax.f32 %v665_v2, 0.0  ;;  %v455_v34 = vmul.f32 %v3262_v28, %v3284_v43  ;;  %v576_v60 = vmul.f32 %v3265_v29, %v3253_v24 }
  0xa7   : > { %835 = vmatpush1.bf16.msra.mxu1 %v712_v38  ;;  %v723_v46 = vpack.c.bf16 %v703_v39, %v695_v31  ;;  %v662_v44 = vadd.f32 %v3373_v58, %v606_v32  ;;  %v670_v47 = vadd.f32 %v3371_v57, %v614_v41  ;;  %v584_v12 = vmul.f32 %v3265_v29, %v3282_v42 }
  0xa8   : > { %v705_v16 = vmax.f32 %v673_v5, 0.0  ;;  %v608_v18 = vadd.f32 %v576_v60, %v3353_v37  ;;  %v430_v36 = vmul.f32 %v3242_v20, %v3309_v0  ;;  %v438_v43 = vmul.f32 %v3242_v20, %v3307_v63 }
  0xa9   : > { %885 = vmatprep.subr.bf16.mxu0 %v723_v46  ;;  %2863 = vmatmul.mubr.msk.bf16.vlgmr.msra.gmra.mxu0 %vm760_vm0, %v3409_v4  ;;  %v694_v24 = vmax.f32 %v662_v44, 0.0  ;;  %v702_v1 = vmax.f32 %v670_v47, 0.0  ;;  %v616_v45 = vadd.f32 %v584_v12, %v455_v34  ;;  %v559_v3 = vmul.f32 %v3245_v21, %v3338_v35 }
  0xaa   : > { %v725_v42 = vpack.c.bf16 %v705_v16, %v697_v33  ;;  %2865 = vmatmul.mubr.msk.bf16.vlgmr.msra.gmra.mxu1 %vm760_vm0, %v3409_v4  ;;  %v664_v37 = vadd.f32 %v3373_v58, %v608_v18  ;;  %v567_v48 = vmul.f32 %v3245_v21, %v3336_v14  ;;  %v432_v20 = vmul.f32 %v3248_v22, %v3309_v0 }
  0xab   : > { %v722_v49 = vpack.c.bf16 %v702_v1, %v694_v24  ;;  %v672_v50 = vadd.f32 %v3371_v57, %v616_v45  ;;  %v591_v25 = vadd.f32 %v559_v3, %v430_v36  ;;  %v440_v51 = vmul.f32 %v3248_v22, %v3307_v63  ;;  %v3492_v1 = vpop.permute.xlu0 %742 }
  0xac   : > { %v4188_v17 = vmov 0   ;;  %938 = vmatprep.subr.bf16.mxu1 %v725_v42  ;;  %v696_v19 = vmax.f32 %v664_v37, 0.0  ;;  %v599_v52 = vadd.f32 %v567_v48, %v438_v43  ;;  %v561_v58 = vmul.f32 %v3251_v23, %v3338_v35  ;;  %v3490_v43 = vpop.permute.xlu1 %747 }
  0xad   : > { %809 = vmatprep.mubr.bf16.mxu0 %v4188_v17  ;;  %v569_v21 = vmul.f32 %v3251_v23, %v3336_v14  ;;  %862 = vmatprep.mubr.bf16.mxu1 %v4188_v17  ;;  %v704_v6 = vmax.f32 %v672_v50, 0.0  ;;  %v647_v57 = vadd.f32 %v3388_v59, %v591_v25  ;;  %v429_v22 = vmul.f32 %v3256_v26, %v3309_v0  ;;  %v2983_v23 = vld [vmem:[%s4176_s2 + $0x8] sm:$0xff]  }
  0xae   : > { %886 = vmatpush1.bf16.msra.mxu0 %v722_v49  ;;  %v437_v13 = vmul.f32 %v3256_v26, %v3307_v63  ;;  %v655_v7 = vadd.f32 %v3386_v40, %v599_v52  ;;  %v593_v8 = vadd.f32 %v561_v58, %v432_v20  ;;  %v558_v9 = vmul.f32 %v3259_v27, %v3338_v35 }
  0xaf   : > { %v601_v53 = vadd.f32 %v569_v21, %v440_v51  ;;  %v724_v56 = vpack.c.bf16 %v704_v6, %v696_v19  ;;  %v679_v10 = vmax.f32 %v647_v57, 0.0  ;;  %v566_v11 = vmul.f32 %v3259_v27, %v3336_v14  ;;  %v3498_v51 = vpop.permute.xlu0 %732 }
  0xb0   : > { %v431_v30 = vmul.f32 %v3262_v28, %v3309_v0  ;;  %v687_v26 = vmax.f32 %v655_v7, 0.0  ;;  %v649_v15 = vadd.f32 %v3388_v59, %v593_v8  ;;  %v590_v31 = vadd.f32 %v558_v9, %v429_v22  ;;  %v3494_v48 = vpop.permute.xlu1 %737 }
  0xb1   : > { %v657_v61 = vadd.f32 %v3386_v40, %v601_v53  ;;  %939 = vmatpush1.bf16.msra.mxu1 %v724_v56  ;;  %v598_v62 = vadd.f32 %v566_v11, %v437_v13  ;;  %v439_v2 = vmul.f32 %v3262_v28, %v3307_v63  ;;  %v560_v38 = vmul.f32 %v3265_v29, %v3338_v35 }
  0xb2   : > { %v568_v27 = vmul.f32 %v3265_v29, %v3336_v14  ;;  %v715_v39 = vpack.c.bf16 %v687_v26, %v679_v10  ;;  %v681_v32 = vmax.f32 %v649_v15, 0.0  ;;  %v646_v41 = vadd.f32 %v3388_v59, %v590_v31  ;;  %2864 = vmatmul.mubr.msk.bf16.gmra.mxu0 %vm760_vm0, %v2983_v23  ;;  %2866 = vmatmul.mubr.msk.bf16.gmra.mxu1 %vm760_vm0, %v2983_v23 }
  0xb3   : > { %v689_v0 = vmax.f32 %v657_v61, 0.0  ;;  %v654_v5 = vadd.f32 %v3386_v40, %v598_v62  ;;  %v592_v33 = vadd.f32 %v560_v38, %v431_v30  ;;  %905 = vmatprep.mubr.bf16.mxu0 %v4188_v17  ;;  %958 = vmatprep.mubr.bf16.mxu1 %v4188_v17 }
  0xb4   : > { %v600_v34 = vadd.f32 %v568_v27, %v439_v2  ;;  %887 = vmatprep.subr.bf16.mxu0 %v715_v39  ;;  %v678_v29 = vmax.f32 %v646_v41, 0.0 }
  0xb5   : > { %v717_v28 = vpack.c.bf16 %v689_v0, %v681_v32  ;;  %v686_v63 = vmax.f32 %v654_v5, 0.0  ;;  %v648_v14 = vadd.f32 %v3388_v59, %v592_v33 }
  0xb6   : > { %v656_v35 = vadd.f32 %v3386_v40, %v600_v34 }
  0xb7   : > { %940 = vmatprep.subr.bf16.mxu1 %v717_v28  ;;  %v714_v60 = vpack.c.bf16 %v686_v63, %v678_v29  ;;  %v680_v46 = vmax.f32 %v648_v14, 0.0 }
  0xb8   : > { %v688_v44 = vmax.f32 %v656_v35, 0.0 }
  0xb9   : > { %888 = vmatpush1.bf16.msra.mxu0 %v714_v60 }
  0xba   : > { %v716_v47 = vpack.c.bf16 %v688_v44, %v680_v46 }
  0xbc   : > { %941 = vmatpush1.bf16.msra.mxu1 %v716_v47  ;;  %2867 = vmatmul.mubr.msk.bf16.vlgmr.msra.gmra.mxu0 %vm760_vm0, %v3409_v4 }
  0xbd   : > { %915 = vmatprep.mubr.bf16.mxu0 %v4188_v17 }
  0xbf   : > { %2869 = vmatmul.mubr.msk.bf16.vlgmr.msra.gmra.mxu1 %vm760_vm0, %v3409_v4 }
  0xc0   : > { %968 = vmatprep.mubr.bf16.mxu1 %v4188_v17 }
  0xc4   : > { %2868 = vmatmul.mubr.msk.bf16.gmra.mxu0 %vm760_vm0, %v2983_v23 }
  0xc5   : > { %1105 = vmatprep.mubr.bf16.mxu0 %v4188_v17 }
  0xc7   : > { %2870 = vmatmul.mubr.msk.bf16.gmra.mxu1 %vm760_vm0, %v2983_v23 }
  0xc8   : > { %1158 = vmatprep.mubr.bf16.mxu1 %v4188_v17 }
 0x169   : > { %v801_v40 = vpop.f32.mrf.mxu0 }
 0x16a   : > { %v854_v59 = vpop.f32.mrf.mxu1  ;;  %v802_v2 = vadd.f32 %v801_v40, %v3498_v51 }
 0x16b   : > { %v803_v12 = vpop.f32.mrf.mxu0  ;;  %v855_v38 = vadd.f32 %v854_v59, %v3498_v51 }
 0x16c   : > { %v856_v16 = vpop.f32.mrf.mxu1  ;;  %v804_v6 = vadd.f32 %v803_v12, %v3498_v51  ;;  %v979_v44 = vmax.f32 %v802_v2, 0.0 }
 0x16d   : > { %v805_v18 = vpop.f32.mrf.mxu0  ;;  %v857_v57 = vadd.f32 %v856_v16, %v3498_v51  ;;  %v981_v47 = vmax.f32 %v855_v38, 0.0 }
 0x16e   : > { %v858_v36 = vpop.f32.mrf.mxu1  ;;  %v806_v53 = vadd.f32 %v805_v18, %v3494_v48  ;;  %v980_v0 = vmax.f32 %v804_v6, 0.0 }
 0x16f   : > { %v807_v24 = vpop.f32.mrf.mxu0  ;;  %v859_v9 = vadd.f32 %v858_v36, %v3494_v48  ;;  %v982_v41 = vmax.f32 %v857_v57, 0.0 }
 0x170   : > { %v860_v4 = vpop.f32.mrf.mxu1  ;;  %v808_v20 = vadd.f32 %v807_v24, %v3494_v48  ;;  %v987_v34 = vmax.f32 %v806_v53, 0.0  ;;  %v3519_v24 = vld [vmem:[%s4176_s2 + $0x10] sm:$0xff]  }
 0x171   : > { %v861_v49 = vadd.f32 %v860_v4, %v3494_v48  ;;  %v989_v28 = vmax.f32 %v859_v9, 0.0 }
 0x172   : > { %v811_v45 = vpop.f32.mrf.mxu0  ;;  %v864_v3 = vpop.f32.mrf.mxu1  ;;  %v988_v10 = vmax.f32 %v808_v20, 0.0  ;;  %v1016_v12 = vpack.c.bf16 %v987_v34, %v979_v44 }
 0x173   : > { %v812_v22 = vadd.f32 %v811_v45, %v3492_v1  ;;  %v865_v13 = vadd.f32 %v864_v3, %v3492_v1  ;;  %v990_v11 = vmax.f32 %v861_v49, 0.0  ;;  %v1018_v16 = vpack.c.bf16 %v989_v28, %v981_v47 }
 0x174   : > { %v813_v42 = vpop.f32.mrf.mxu0  ;;  %v866_v37 = vpop.f32.mrf.mxu1  ;;  %v1017_v60 = vpack.c.bf16 %v988_v10, %v980_v0 }
 0x175   : > { %v814_v19 = vadd.f32 %v813_v42, %v3492_v1  ;;  %v867_v52 = vadd.f32 %v866_v37, %v3492_v1  ;;  %v995_v27 = vmax.f32 %v812_v22, 0.0  ;;  %v997_v39 = vmax.f32 %v865_v13, 0.0 }
 0x176   : > { %v815_v50 = vpop.f32.mrf.mxu0  ;;  %v868_v25 = vpop.f32.mrf.mxu1  ;;  %v1019_v46 = vpack.c.bf16 %v990_v11, %v982_v41 }
 0x177   : > { %v816_v58 = vadd.f32 %v815_v50, %v3490_v43  ;;  %v869_v21 = vadd.f32 %v868_v25, %v3490_v43  ;;  %v996_v15 = vmax.f32 %v814_v19, 0.0  ;;  %v998_v61 = vmax.f32 %v867_v52, 0.0 }
 0x178   : > { %v817_v7 = vpop.f32.mrf.mxu0  ;;  %v870_v8 = vpop.f32.mrf.mxu1 }
 0x179   : > { %v818_v23 = vadd.f32 %v817_v7, %v3490_v43  ;;  %v871_v56 = vadd.f32 %v870_v8, %v3490_v43  ;;  %v1003_v30 = vmax.f32 %v816_v58, 0.0  ;;  %v1005_v26 = vmax.f32 %v869_v21, 0.0  ;;  %v2985_v8 = vld [vmem:[%s4176_s2 + $0x18] sm:$0xff]  }
 0x17b   : > { %v1004_v31 = vmax.f32 %v818_v23, 0.0  ;;  %v1006_v62 = vmax.f32 %v871_v56, 0.0  ;;  %v1024_v29 = vpack.c.bf16 %v1003_v30, %v995_v27  ;;  %v1026_v63 = vpack.c.bf16 %v1005_v26, %v997_v39 }
 0x17c   : > { %v907_v32 = vpop.f32.mrf.mxu0 }
 0x17d   : > { %v1025_v5 = vpack.c.bf16 %v1004_v31, %v996_v15  ;;  %v1027_v33 = vpack.c.bf16 %v1006_v62, %v998_v61  ;;  %v908_v19 = vadd.f32 %v907_v32, %v3498_v51 }
 0x17e   : > { %v909_v35 = vpop.f32.mrf.mxu0 }
 0x17f   : > { %v3514_v14 = vpop.f32.mrf.mxu1  ;;  %1085 = vmatprep.subr.bf16.mxu0 %v1025_v5  ;;  %1138 = vmatprep.subr.bf16.mxu1 %v1027_v33  ;;  %v910_v52 = vadd.f32 %v909_v35, %v3498_v51  ;;  %v983_v34 = vmax.f32 %v908_v19, 0.0 }
 0x180   : > { %v911_v59 = vpop.f32.mrf.mxu0  ;;  %1086 = vmatpush1.bf16.msra.mxu0 %v1024_v29  ;;  %1139 = vmatpush1.bf16.msra.mxu1 %v1026_v63 }
 0x181   : > { %v962_v40 = vpop.f32.mrf.mxu1  ;;  %1087 = vmatprep.subr.bf16.mxu0 %v1017_v60  ;;  %1140 = vmatprep.subr.bf16.mxu1 %v1019_v46  ;;  %v912_v9 = vadd.f32 %v911_v59, %v3494_v48  ;;  %v984_v61 = vmax.f32 %v910_v52, 0.0 }
 0x182   : > { %v913_v36 = vpop.f32.mrf.mxu0  ;;  %v963_v53 = vadd.f32 %v962_v40, %v3498_v51 }
 0x183   : > { %v964_v18 = vpop.f32.mrf.mxu1  ;;  %v914_v49 = vadd.f32 %v913_v36, %v3494_v48  ;;  %v991_v0 = vmax.f32 %v912_v9, 0.0  ;;  %v3563_v36 = vpop.permute.xlu0 %1049 }
 0x184   : > { %v917_v45 = vpop.f32.mrf.mxu0  ;;  %1088 = vmatpush1.bf16.msra.mxu0 %v1016_v12  ;;  %1141 = vmatpush1.bf16.msra.mxu1 %v1018_v16  ;;  %v965_v31 = vadd.f32 %v964_v18, %v3494_v48  ;;  %v3561_v12 = vpop.permute.xlu1 %1054 }
 0x185   : > { %v966_v4 = vpop.f32.mrf.mxu1  ;;  %v918_v58 = vadd.f32 %v917_v45, %v3492_v1  ;;  %v992_v11 = vmax.f32 %v914_v49, 0.0 }
 0x186   : > { %v919_v42 = vpop.f32.mrf.mxu0  ;;  %v967_v57 = vadd.f32 %v966_v4, %v3494_v48  ;;  %v993_v28 = vmax.f32 %v965_v31, 0.0 }
 0x187   : > { %v970_v3 = vpop.f32.mrf.mxu1  ;;  %2881 = vmatmul.mubr.msk.bf16.vlgmr.msra.gmra.mxu0 %vm760_vm0, %v3519_v24  ;;  %2883 = vmatmul.mubr.msk.bf16.vlgmr.msra.gmra.mxu1 %vm760_vm0, %v3519_v24  ;;  %v920_v50 = vadd.f32 %v919_v42, %v3492_v1  ;;  %v999_v62 = vmax.f32 %v918_v58, 0.0  ;;  %v1021_v48 = vpack.c.bf16 %v992_v11, %v984_v61 }
 0x188   : > { %v921_v20 = vpop.f32.mrf.mxu0  ;;  %1115 = vmatprep.mubr.bf16.mxu0 %v4188_v17  ;;  %1168 = vmatprep.mubr.bf16.mxu1 %v4188_v17  ;;  %v971_v23 = vadd.f32 %v970_v3, %v3492_v1  ;;  %v994_v38 = vmax.f32 %v967_v57, 0.0  ;;  %v3565_v42 = vpop.permute.xlu1 %1044 }
 0x189   : > { %v972_v37 = vpop.f32.mrf.mxu1  ;;  %v922_v25 = vadd.f32 %v921_v20, %v3490_v43  ;;  %v1000_v30 = vmax.f32 %v920_v50, 0.0 }
 0x18a   : > { %v923_v6 = vpop.f32.mrf.mxu0  ;;  %v973_v22 = vadd.f32 %v972_v37, %v3492_v1  ;;  %v961_v1 = vadd.f32 %v3514_v14, %v3498_v51  ;;  %v1001_v41 = vmax.f32 %v971_v23, 0.0  ;;  %v1020_v51 = vpack.c.bf16 %v991_v0, %v983_v34 }
 0x18b   : > { %v974_v21 = vpop.f32.mrf.mxu1  ;;  %v924_v7 = vadd.f32 %v923_v6, %v3490_v43  ;;  %v1007_v56 = vmax.f32 %v922_v25, 0.0  ;;  %v3569_v25 = vpop.permute.xlu0 %1039 }
 0x18c   : > { %v975_v13 = vadd.f32 %v974_v21, %v3490_v43  ;;  %v1002_v27 = vmax.f32 %v973_v22, 0.0  ;;  %v985_v35 = vmax.f32 %v961_v1, 0.0 }
 0x18d   : > { %v976_v10 = vpop.f32.mrf.mxu1  ;;  %v1008_v26 = vmax.f32 %v924_v7, 0.0  ;;  %v1028_v5 = vpack.c.bf16 %v1007_v56, %v999_v62 }
 0x18e   : > { %v977_v15 = vadd.f32 %v976_v10, %v3490_v43  ;;  %v1009_v2 = vmax.f32 %v975_v13, 0.0  ;;  %v986_v43 = vmax.f32 %v963_v53, 0.0  ;;  %v1022_v14 = vpack.c.bf16 %v993_v28, %v985_v35 }
 0x18f   : > { %v1029_v39 = vpack.c.bf16 %v1008_v26, %v1000_v30  ;;  %2882 = vmatmul.mubr.msk.bf16.gmra.mxu0 %vm760_vm0, %v2985_v8  ;;  %2884 = vmatmul.mubr.msk.bf16.gmra.mxu1 %vm760_vm0, %v2985_v8 }
 0x190   : > { %v1010_v32 = vmax.f32 %v977_v15, 0.0  ;;  %1211 = vmatprep.mubr.bf16.mxu0 %v4188_v17  ;;  %1264 = vmatprep.mubr.bf16.mxu1 %v4188_v17  ;;  %v1030_v29 = vpack.c.bf16 %v1009_v2, %v1001_v41  ;;  %v1023_v63 = vpack.c.bf16 %v994_v38, %v986_v43 }
 0x191   : > { %1191 = vmatprep.subr.bf16.mxu0 %v1029_v39 }
 0x192   : > { %v1031_v33 = vpack.c.bf16 %v1010_v32, %v1002_v27  ;;  %1192 = vmatpush1.bf16.msra.mxu0 %v1028_v5 }
 0x193   : > { %1193 = vmatprep.subr.bf16.mxu0 %v1021_v48 }
 0x194   : > { %1244 = vmatprep.subr.bf16.mxu1 %v1031_v33 }
 0x195   : > { %1245 = vmatpush1.bf16.msra.mxu1 %v1030_v29 }
 0x196   : > { %1246 = vmatprep.subr.bf16.mxu1 %v1023_v63  ;;  %1194 = vmatpush1.bf16.msra.mxu0 %v1020_v51 }
 0x199   : > { %1247 = vmatpush1.bf16.msra.mxu1 %v1022_v14  ;;  %2885 = vmatmul.mubr.msk.bf16.vlgmr.msra.gmra.mxu0 %vm760_vm0, %v3519_v24 }
 0x19a   : > { %1221 = vmatprep.mubr.bf16.mxu0 %v4188_v17 }
 0x19c   : > { %2887 = vmatmul.mubr.msk.bf16.vlgmr.msra.gmra.mxu1 %vm760_vm0, %v3519_v24 }
 0x19d   : > { %1274 = vmatprep.mubr.bf16.mxu1 %v4188_v17 }
 0x1a1   : > { %2886 = vmatmul.mubr.msk.bf16.gmra.mxu0 %vm760_vm0, %v2985_v8 }
 0x1a2   : > { %1375 = vmatprep.mubr.bf16.mxu0 %v4188_v17 }
 0x1a4   : > { %2888 = vmatmul.mubr.msk.bf16.gmra.mxu1 %vm760_vm0, %v2985_v8 }
 0x1a5   : > { %1416 = vmatprep.mubr.bf16.mxu1 %v4188_v17 }
 0x247   : > { %v1107_v60 = vpop.f32.mrf.mxu0  ;;  %v1160_v46 = vpop.f32.mrf.mxu1 }
 0x248   : > { %v1108_v2 = vadd.f32 %v1107_v60, %v3569_v25  ;;  %v1161_v38 = vadd.f32 %v1160_v46, %v3569_v25 }
 0x249   : > { %v1109_v44 = vpop.f32.mrf.mxu0  ;;  %v1162_v47 = vpop.f32.mrf.mxu1 }
 0x24a   : > { %v1110_v6 = vadd.f32 %v1109_v44, %v3569_v25  ;;  %v1163_v57 = vadd.f32 %v1162_v47, %v3569_v25  ;;  %v1285_v51 = vmax.f32 %v1108_v2, 0.0  ;;  %v1287_v14 = vmax.f32 %v1161_v38, 0.0 }
 0x24b   : > { %v1111_v40 = vpop.f32.mrf.mxu0  ;;  %v1164_v59 = vpop.f32.mrf.mxu1 }
 0x24c   : > { %v1112_v53 = vadd.f32 %v1111_v40, %v3565_v42  ;;  %v1165_v9 = vadd.f32 %v1164_v59, %v3565_v42  ;;  %v1286_v1 = vmax.f32 %v1110_v6, 0.0  ;;  %v1288_v0 = vmax.f32 %v1163_v57, 0.0 }
 0x24d   : > { %v1113_v16 = vpop.f32.mrf.mxu0  ;;  %v1166_v18 = vpop.f32.mrf.mxu1 }
 0x24e   : > { %v1114_v37 = vadd.f32 %v1113_v16, %v3565_v42  ;;  %v1167_v20 = vadd.f32 %v1166_v18, %v3565_v42  ;;  %v1293_v43 = vmax.f32 %v1112_v53, 0.0  ;;  %v1295_v48 = vmax.f32 %v1165_v9, 0.0 }
 0x24f   : > { %v1117_v24 = vpop.f32.mrf.mxu0  ;;  %v1170_v4 = vpop.f32.mrf.mxu1 }
 0x250   : > { %v1118_v22 = vadd.f32 %v1117_v24, %v3563_v36  ;;  %v1171_v13 = vadd.f32 %v1170_v4, %v3563_v36  ;;  %v1294_v10 = vmax.f32 %v1114_v37, 0.0  ;;  %v1296_v11 = vmax.f32 %v1167_v20, 0.0  ;;  %v1317_v24 = vld [vmem:[%s4179_s5] sm:$0x3] }
 0x251   : > { %v1119_v45 = vpop.f32.mrf.mxu0  ;;  %v1172_v3 = vpop.f32.mrf.mxu1  ;;  %v1318_v44 = vpack.c.bf16 %v1293_v43, %v1285_v51  ;;  %v1320_v47 = vpack.c.bf16 %v1295_v48, %v1287_v14 }
 0x252   : > { %v1120_v19 = vadd.f32 %v1119_v45, %v3563_v36  ;;  %v1173_v52 = vadd.f32 %v1172_v3, %v3563_v36  ;;  %v1301_v27 = vmax.f32 %v1118_v22, 0.0  ;;  %v1303_v39 = vmax.f32 %v1171_v13, 0.0 }
 0x253   : > { %v1121_v49 = vpop.f32.mrf.mxu0  ;;  %v1174_v50 = vpop.f32.mrf.mxu1  ;;  %v1319_v63 = vpack.c.bf16 %v1294_v10, %v1286_v1  ;;  %v1321_v35 = vpack.c.bf16 %v1296_v11, %v1288_v0 }
 0x254   : > { %v1122_v58 = vadd.f32 %v1121_v49, %v3561_v12  ;;  %v1175_v21 = vadd.f32 %v1174_v50, %v3561_v12  ;;  %v1302_v15 = vmax.f32 %v1120_v19, 0.0  ;;  %v1304_v61 = vmax.f32 %v1173_v52, 0.0 }
 0x255   : > { %v1123_v7 = vpop.f32.mrf.mxu0  ;;  %v1176_v8 = vpop.f32.mrf.mxu1 }
 0x256   : > { %v1124_v23 = vadd.f32 %v1123_v7, %v3561_v12  ;;  %v1177_v56 = vadd.f32 %v1176_v8, %v3561_v12  ;;  %v1309_v30 = vmax.f32 %v1122_v58, 0.0  ;;  %v1311_v26 = vmax.f32 %v1175_v21, 0.0 }
 0x258   : > { %v1310_v31 = vmax.f32 %v1124_v23, 0.0  ;;  %v1312_v62 = vmax.f32 %v1177_v56, 0.0  ;;  %v1326_v33 = vpack.c.bf16 %v1309_v30, %v1301_v27  ;;  %v1328_v34 = vpack.c.bf16 %v1311_v26, %v1303_v39 }
 0x259   : > { %v1213_v32 = vpop.f32.mrf.mxu0 }
 0x25a   : > { %v1327_v41 = vpack.c.bf16 %v1310_v31, %v1302_v15  ;;  %v1329_v5 = vpack.c.bf16 %v1312_v62, %v1304_v61  ;;  %v1214_v19 = vadd.f32 %v1213_v32, %v3569_v25 }
 0x25b   : > { %v1215_v29 = vpop.f32.mrf.mxu0 }
 0x25c   : > { %v1266_v28 = vpop.f32.mrf.mxu1  ;;  %1355 = vmatprep.subr.bf16.mxu0 %v1327_v41  ;;  %1396 = vmatprep.subr.bf16.mxu1 %v1329_v5  ;;  %v1216_v52 = vadd.f32 %v1215_v29, %v3569_v25  ;;  %v1289_v48 = vmax.f32 %v1214_v19, 0.0 }
 0x25d   : > { %v1217_v46 = vpop.f32.mrf.mxu0  ;;  %1356 = vmatpush1.bf16.msra.mxu0 %v1326_v33  ;;  %1397 = vmatpush1.bf16.msra.mxu1 %v1328_v34  ;;  %v1267_v32 = vadd.f32 %v1266_v28, %v3569_v25  ;;  %v3614_v28 = vpop.permute.xlu1 %1524 }
 0x25e   : > { %v1268_v60 = vpop.f32.mrf.mxu1  ;;  %1357 = vmatprep.subr.bf16.mxu0 %v1319_v63  ;;  %1398 = vmatprep.subr.bf16.mxu1 %v1321_v35  ;;  %v1218_v53 = vadd.f32 %v1217_v46, %v3565_v42  ;;  %v1290_v15 = vmax.f32 %v1216_v52, 0.0 }
 0x25f   : > { %v1219_v59 = vpop.f32.mrf.mxu0  ;;  %v1269_v8 = vadd.f32 %v1268_v60, %v3569_v25  ;;  %v1291_v34 = vmax.f32 %v1267_v32, 0.0  ;;  %v3612_v25 = vpop.permute.xlu0 %1337 }
 0x260   : > { %v1270_v40 = vpop.f32.mrf.mxu1  ;;  %v1220_v20 = vadd.f32 %v1219_v59, %v3565_v42  ;;  %v1297_v1 = vmax.f32 %v1218_v53, 0.0 }
 0x261   : > { %v1223_v18 = vpop.f32.mrf.mxu0  ;;  %1358 = vmatpush1.bf16.msra.mxu0 %v1318_v44  ;;  %1399 = vmatpush1.bf16.msra.mxu1 %v1320_v47  ;;  %v1271_v61 = vadd.f32 %v1270_v40, %v3565_v42  ;;  %v1292_v41 = vmax.f32 %v1269_v8, 0.0  ;;  %v3618_v51 = vpop.permute.xlu1 %1613 }
 0x262   : > { %v1272_v16 = vpop.f32.mrf.mxu1  ;;  %v1224_v58 = vadd.f32 %v1223_v18, %v3563_v36  ;;  %v1298_v10 = vmax.f32 %v1220_v20, 0.0  ;;  %v1322_v29 = vpack.c.bf16 %v1297_v1, %v1289_v48 }
 0x263   : > { %v1225_v45 = vpop.f32.mrf.mxu0  ;;  %v1273_v57 = vadd.f32 %v1272_v16, %v3565_v42  ;;  %v3616_v35 = vpop.permute.xlu0 %1529 }
 0x264   : > { %v1276_v4 = vpop.f32.mrf.mxu1  ;;  %2889 = vmatmul.mubr.msk.bf16.vlgmr.msra.gmra.mxu0 %vm760_vm0, %v1317_v24  ;;  %2890 = vmatmul.mubr.msk.bf16.vlgmr.msra.gmra.mxu1 %vm760_vm0, %v1317_v24  ;;  %v1226_v49 = vadd.f32 %v1225_v45, %v3563_v36  ;;  %v1305_v31 = vmax.f32 %v1224_v58, 0.0  ;;  %v1323_v5 = vpack.c.bf16 %v1298_v10, %v1290_v15 }
 0x265   : > { %v1227_v37 = vpop.f32.mrf.mxu0  ;;  %1457 = vmatprep.mubr.bf16.mxu0 %v4188_v17  ;;  %1498 = vmatprep.mubr.bf16.mxu1 %v4188_v17  ;;  %v1277_v9 = vadd.f32 %v1276_v4, %v3563_v36  ;;  %v1300_v2 = vmax.f32 %v1273_v57, 0.0  ;;  %v3622_v60 = vpop.permute.xlu1 %1734 }
 0x266   : > { %v1278_v3 = vpop.f32.mrf.mxu1  ;;  %v1228_v50 = vadd.f32 %v1227_v37, %v3561_v12  ;;  %v1306_v11 = vmax.f32 %v1226_v49, 0.0  ;;  %v4189_v49 = vld [vmem:[#allocation2_spill] sm:$0xff] }
 0x267   : > { %v1229_v6 = vpop.f32.mrf.mxu0  ;;  %v1279_v22 = vadd.f32 %v1278_v3, %v3563_v36  ;;  %v1307_v36 = vmax.f32 %v1277_v9, 0.0  ;;  %v1325_v42 = vpack.c.bf16 %v1300_v2, %v1292_v41  ;;  %v3620_v14 = vpop.permute.xlu0 %1618 }
 0x268   : > { %v1280_v21 = vpop.f32.mrf.mxu1  ;;  %v1230_v7 = vadd.f32 %v1229_v6, %v3561_v12  ;;  %v1313_v23 = vmax.f32 %v1228_v50, 0.0 }
 0x269   : > { %v1281_v13 = vadd.f32 %v1280_v21, %v3561_v12  ;;  %v1308_v38 = vmax.f32 %v1279_v22, 0.0  ;;  %v3626_v44 = vpop.permute.xlu1 %1514 }
 0x26a   : > { %v1282_v56 = vpop.f32.mrf.mxu1  ;;  %v1314_v30 = vmax.f32 %v1230_v7, 0.0  ;;  %v1330_v0 = vpack.c.bf16 %v1313_v23, %v1305_v31 }
 0x26b   : > { %v1283_v26 = vadd.f32 %v1282_v56, %v3561_v12  ;;  %v1315_v62 = vmax.f32 %v1281_v13, 0.0  ;;  %v1299_v12 = vmax.f32 %v1271_v61, 0.0  ;;  %v3624_v46 = vpop.permute.xlu0 %1739 }
 0x26c   : > { %v1331_v27 = vpack.c.bf16 %v1314_v30, %v1306_v11 }
 0x26d   : > { %v1316_v39 = vmax.f32 %v1283_v26, 0.0  ;;  %v1332_v33 = vpack.c.bf16 %v1315_v62, %v1307_v36  ;;  %v1324_v63 = vpack.c.bf16 %v1299_v12, %v1291_v34  ;;  %v3630_v40 = vpop.permute.xlu1 %1603 }
 0x26e   : > { %1437 = vmatprep.subr.bf16.mxu0 %v1331_v27 }
 0x26f   : > { %v1333_v43 = vpack.c.bf16 %v1316_v39, %v1308_v38  ;;  %1438 = vmatpush1.bf16.msra.mxu0 %v1330_v0  ;;  %v3628_v47 = vpop.permute.xlu0 %1519 }
 0x270   : > { %1439 = vmatprep.subr.bf16.mxu0 %v1323_v5 }
 0x271   : > { %1478 = vmatprep.subr.bf16.mxu1 %v1333_v43  ;;  %v3644_v13 = vpop.permute.xlu1 %1724 }
 0x272   : > { %1479 = vmatpush1.bf16.msra.mxu1 %v1332_v33 }
 0x273   : > { %1480 = vmatprep.subr.bf16.mxu1 %v1325_v42  ;;  %1440 = vmatpush1.bf16.msra.mxu0 %v1322_v29  ;;  %v3632_v59 = vpop.permute.xlu0 %1608 }
 0x276   : > { %1481 = vmatpush1.bf16.msra.mxu1 %v1324_v63  ;;  %2891 = vmatmul.mubr.msk.bf16.vlgmr.msra.gmra.mxu0 %vm760_vm0, %v1317_v24 }
 0x277   : > { %2021 = vmatprep.mubr.bf16.mxu0 %v4188_v17  ;;  %v3646_v7 = vpop.permute.xlu0 %1729 }
 0x279   : > { %2892 = vmatmul.mubr.msk.bf16.vlgmr.msra.gmra.mxu1 %vm760_vm0, %v1317_v24 }
 0x27a   : > { %2074 = vmatprep.mubr.bf16.mxu1 %v4188_v17 }
 0x324   : > { %v1377_v16 = vpop.f32.mrf.mxu0  ;;  %v1418_v18 = vpop.f32.mrf.mxu1 }
 0x325   : > { %v1378_v24 = vadd.f32 %v1377_v16, %v3612_v25  ;;  %v1419_v4 = vadd.f32 %v1418_v18, %v3612_v25 }
 0x326   : > { %v1379_v45 = vpop.f32.mrf.mxu0  ;;  %v1420_v3 = vpop.f32.mrf.mxu1 }
 0x327   : > { %v1535_v37 = vrot.slane %v1378_v24, %v3212_v54  ;;  %v1624_v20 = vrot.slane %v1378_v24, %v3214_v55  ;;  %v1745_v50 = vrot.slane %v1378_v24, %v4189_v49  ;;  %v1543_v19 = vrot.slane %v1419_v4, %v3212_v54 }
 0x328   : > { %v1632_v52 = vrot.slane %v1419_v4, %v3214_v55  ;;  %v1753_v58 = vrot.slane %v1419_v4, %v4189_v49  ;;  %v1380_v21 = vadd.f32 %v1379_v45, %v3612_v25  ;;  %v1421_v6 = vadd.f32 %v1420_v3, %v3612_v25  ;;  %v1381_v57 = vpop.f32.mrf.mxu0  ;;  %v1422_v22 = vpop.f32.mrf.mxu1 }
 0x329   : > { %v3649_v8 = vmul.f32 %v1535_v37, %v3626_v44  ;;  %v3652_v53 = vmul.f32 %v1535_v37, %v3628_v47  ;;  %v1580_v9 = vmul.f32 %v1535_v37, %v3614_v28  ;;  %v1588_v23 = vmul.f32 %v1535_v37, %v3616_v35 }
 0x32a   : > { %v3657_v56 = vmul.f32 %v1624_v20, %v3630_v40  ;;  %v3660_v10 = vmul.f32 %v1624_v20, %v3632_v59  ;;  %v1669_v11 = vmul.f32 %v1624_v20, %v3618_v51  ;;  %v1677_v30 = vmul.f32 %v1624_v20, %v3620_v14  ;;  %v1382_v26 = vpop.f32.mrf.mxu0  ;;  %v1423_v15 = vpop.f32.mrf.mxu1 }
 0x32b   : > { %v3665_v61 = vmul.f32 %v1745_v50, %v3644_v13  ;;  %v3668_v31 = vmul.f32 %v1745_v50, %v3646_v7  ;;  %v1790_v62 = vmul.f32 %v1745_v50, %v3622_v60  ;;  %v1798_v2 = vmul.f32 %v1745_v50, %v3624_v46  ;;  %v3742_v26 = vpop.permute.xlu0 %1860 }
 0x32c   : > { %v3673_v38 = vmul.f32 %v1543_v19, %v3626_v44  ;;  %v3676_v27 = vmul.f32 %v1543_v19, %v3628_v47  ;;  %v1582_v39 = vmul.f32 %v1543_v19, %v3614_v28  ;;  %v1590_v32 = vmul.f32 %v1543_v19, %v3616_v35 }
 0x32d   : > { %4190 = vst [vmem:[#allocation2_spill] sm:$0xff] %v3668_v31  ;;  %v3681_v1 = vmul.f32 %v1632_v52, %v3630_v40  ;;  %v3684_v36 = vmul.f32 %v1632_v52, %v3632_v59  ;;  %v1671_v0 = vmul.f32 %v1632_v52, %v3618_v51  ;;  %v1679_v41 = vmul.f32 %v1632_v52, %v3620_v14 }
 0x32e   : > { %v3689_v5 = vmul.f32 %v1753_v58, %v3644_v13  ;;  %v3692_v43 = vmul.f32 %v1753_v58, %v3646_v7  ;;  %v1792_v48 = vmul.f32 %v1753_v58, %v3622_v60  ;;  %v3696_v12 = vmul.f32 %v1753_v58, %v3624_v46 }
 0x32f   : > { %v3699_v33 = vrot.slane %v1380_v21, %v3212_v54  ;;  %v3702_v42 = vrot.slane %v1380_v21, %v3214_v55  ;;  %v3705_v34 = vrot.slane %v1380_v21, %v4189_v49  ;;  %v3708_v29 = vrot.slane %v1421_v6, %v3212_v54 }
 0x330   : > { %4191 = vst [vmem:[#allocation3_spill] sm:$0xff] %v3689_v5  ;;  %4192 = vst [vmem:[#allocation4_spill] sm:$0xff] %v3692_v43  ;;  %v3711_v63 = vrot.slane %v1421_v6, %v3214_v55  ;;  %v3714_v16 = vrot.slane %v1421_v6, %v4189_v49  ;;  %v1701_v18 = vadd.f32 %v1669_v11, %v1580_v9 }
 0x331   : > { %v1709_v24 = vadd.f32 %v1677_v30, %v1588_v23  ;;  %v1581_v4 = vmul.f32 %v3699_v33, %v3614_v28  ;;  %v1589_v45 = vmul.f32 %v3699_v33, %v3616_v35  ;;  %v1670_v3 = vmul.f32 %v3702_v42, %v3618_v51  ;;  %v3740_v30 = vpop.permute.xlu1 %1855 }
 0x332   : > { %v1678_v37 = vmul.f32 %v3702_v42, %v3620_v14  ;;  %v1791_v20 = vmul.f32 %v3705_v34, %v3622_v60  ;;  %v1799_v50 = vmul.f32 %v3705_v34, %v3624_v46  ;;  %v1583_v19 = vmul.f32 %v3708_v29, %v3614_v28 }
 0x333   : > { %v1591_v52 = vmul.f32 %v3708_v29, %v3616_v35  ;;  %v1702_v58 = vadd.f32 %v1670_v3, %v1581_v4  ;;  %v1672_v6 = vmul.f32 %v3711_v63, %v3618_v51  ;;  %v1680_v57 = vmul.f32 %v3711_v63, %v3620_v14 }
 0x334   : > { %v1710_v21 = vadd.f32 %v1678_v37, %v1589_v45  ;;  %v1793_v22 = vmul.f32 %v3714_v16, %v3622_v60  ;;  %v1801_v9 = vmul.f32 %v3714_v16, %v3624_v46  ;;  %v1822_v23 = vadd.f32 %v1790_v62, %v1701_v18 }
 0x335   : > { %v1830_v11 = vadd.f32 %v1798_v2, %v1709_v24  ;;  %v1823_v15 = vadd.f32 %v1791_v20, %v1702_v58  ;;  %v1704_v45 = vadd.f32 %v1672_v6, %v1583_v19  ;;  %v1712_v3 = vadd.f32 %v1680_v57, %v1591_v52 }
 0x336   : > { %v1831_v4 = vadd.f32 %v1799_v50, %v1710_v21  ;;  %v1459_v37 = vpop.f32.mrf.mxu0  ;;  %v3745_v17 = vadd.f32 %v3740_v30, %v1822_v23  ;;  %v1703_v5 = vadd.f32 %v1671_v0, %v1582_v39  ;;  %v3750_v31 = vadd.f32 %v1679_v41, %v1590_v32 }
 0x337   : > { %v3748_v43 = vadd.f32 %v3742_v26, %v1830_v11  ;;  %v1460_v62 = vadd.f32 %v1459_v37, %v3612_v25  ;;  %v1880_v2 = vadd.f32 %v3740_v30, %v1823_v15  ;;  %v1825_v24 = vadd.f32 %v1793_v22, %v1704_v45 }
 0x338   : > { %v1888_v18 = vadd.f32 %v3742_v26, %v1831_v4  ;;  %v1461_v50 = vpop.f32.mrf.mxu0  ;;  %v1833_v19 = vadd.f32 %v1801_v9, %v1712_v3  ;;  %v1911_v52 = vmax.f32 %v3745_v17, 0.0  ;;  %v1824_v21 = vadd.f32 %v1792_v48, %v1703_v5 }
 0x339   : > { %v1500_v20 = vpop.f32.mrf.mxu1  ;;  %v1919_v58 = vmax.f32 %v3748_v43, 0.0  ;;  %v1551_v6 = vrot.slane %v1460_v62, %v3212_v54  ;;  %v1640_v39 = vrot.slane %v1460_v62, %v3214_v55  ;;  %v1761_v32 = vrot.slane %v1460_v62, %v4189_v49 }
 0x33a   : > { %v1501_v0 = vadd.f32 %v1500_v20, %v3612_v25  ;;  %v1462_v41 = vadd.f32 %v1461_v50, %v3612_v25  ;;  %v1912_v22 = vmax.f32 %v1880_v2, 0.0  ;;  %v1920_v23 = vmax.f32 %v1888_v18, 0.0  ;;  %v1463_v11 = vpop.f32.mrf.mxu0 }
 0x33b   : > { %v1502_v57 = vpop.f32.mrf.mxu1  ;;  %v1882_v9 = vadd.f32 %v3740_v30, %v1825_v24  ;;  %v3764_v17 = vmul.f32 %v1551_v6, %v3626_v44  ;;  %v3767_v5 = vmul.f32 %v1551_v6, %v3628_v47  ;;  %v3770_v43 = vmul.f32 %v1551_v6, %v3614_v28 }
 0x33c   : > { %v3773_v48 = vmul.f32 %v1551_v6, %v3616_v35  ;;  %v3776_v15 = vmul.f32 %v1640_v39, %v3630_v40  ;;  %v3779_v4 = vmul.f32 %v1640_v39, %v3632_v59  ;;  %v3782_v45 = vmul.f32 %v1640_v39, %v3618_v51  ;;  %v1464_v62 = vpop.f32.mrf.mxu0 }
 0x33d   : > { %4193 = vst [vmem:[#allocation5_spill] sm:$0xff] %v3764_v17  ;;  %4194 = vst [vmem:[#allocation6_spill] sm:$0xff] %v3767_v5  ;;  %v3785_v3 = vmul.f32 %v1640_v39, %v3620_v14  ;;  %v1504_v37 = vpop.f32.mrf.mxu1  ;;  %v3788_v2 = vmul.f32 %v1761_v32, %v3644_v13  ;;  %v3791_v18 = vmul.f32 %v1761_v32, %v3646_v7 }
 0x33e   : > { %4195 = vst [vmem:[#allocation7_spill] sm:$0xff] %v3776_v15  ;;  %4196 = vst [vmem:[#allocation8_spill] sm:$0xff] %v3779_v4  ;;  %v3794_v24 = vmul.f32 %v1761_v32, %v3622_v60  ;;  %v3797_v20 = vmul.f32 %v1761_v32, %v3624_v46  ;;  %v1559_v50 = vrot.slane %v1501_v0, %v3212_v54 }
 0x33f   : > { %4197 = vst [vmem:[#allocation9_spill] sm:$0xff] %v3788_v2  ;;  %4198 = vst [vmem:[#allocation10_spill] sm:$0xff] %v3791_v18  ;;  %v1648_v6 = vrot.slane %v1501_v0, %v3214_v55  ;;  %v1769_v39 = vrot.slane %v1501_v0, %v4189_v49  ;;  %v3803_v11 = vrot.slane %v1462_v41, %v3212_v54  ;;  %v1505_v37 = vpop.f32.mrf.mxu1 }
 0x340   : > { %v3806_v62 = vrot.slane %v1462_v41, %v3214_v55  ;;  %v3809_v18 = vrot.slane %v1462_v41, %v4189_v49  ;;  %v1503_v2 = vadd.f32 %v1502_v57, %v3612_v25  ;;  %v1941_v32 = vpack.c.bf16 %v1920_v23, %v1912_v22 }
 0x341   : > { %v3813_v4 = vmul.f32 %v1559_v50, %v3626_v44  ;;  %v3816_v5 = vmul.f32 %v1559_v50, %v3628_v47  ;;  %v3819_v0 = vmul.f32 %v1559_v50, %v3614_v28  ;;  %v3822_v37 = vmul.f32 %v1559_v50, %v3616_v35 }
 0x342   : > { %v3825_v15 = vmul.f32 %v1648_v6, %v3630_v40  ;;  %v3828_v41 = vmul.f32 %v1648_v6, %v3632_v59  ;;  %v3831_v25 = vmul.f32 %v1648_v6, %v3618_v51  ;;  %v3834_v57 = vmul.f32 %v1648_v6, %v3620_v14  ;;  %2001 = vmatprep.subr.bf16.mxu0 %v1941_v32 }
 0x343   : > { %4199 = vst [vmem:[#allocation11_spill] sm:$0xff] %v3813_v4  ;;  %4200 = vst [vmem:[#allocation12_spill] sm:$0xff] %v3816_v5  ;;  %v3837_v22 = vmul.f32 %v1769_v39, %v3644_v13  ;;  %v3840_v23 = vmul.f32 %v1769_v39, %v3646_v7  ;;  %v3843_v50 = vmul.f32 %v1769_v39, %v3622_v60 }
 0x344   : > { %4201 = vst [vmem:[#allocation13_spill] sm:$0xff] %v3825_v15  ;;  %4202 = vst [vmem:[#allocation14_spill] sm:$0xff] %v3828_v41  ;;  %v3846_v5 = vmul.f32 %v1769_v39, %v3624_v46  ;;  %v3849_v41 = vrot.slane %v1503_v2, %v3212_v54  ;;  %v3852_v15 = vrot.slane %v1503_v2, %v3214_v55 }
 0x345   : > { %4203 = vst [vmem:[#allocation15_spill] sm:$0xff] %v3837_v22  ;;  %4204 = vst [vmem:[#allocation16_spill] sm:$0xff] %v3840_v23  ;;  %v3855_v6 = vrot.slane %v1503_v2, %v4189_v49  ;;  %v1890_v32 = vadd.f32 %v3742_v26, %v1833_v19  ;;  %v1914_v22 = vmax.f32 %v1882_v9, 0.0  ;;  %v1940_v4 = vpack.c.bf16 %v1919_v58, %v1911_v52 }
 0x346   : > { %v1832_v23 = vadd.f32 %v3696_v12, %v3750_v31  ;;  %v1881_v17 = vadd.f32 %v3740_v30, %v1824_v21  ;;  %v1565_v54 = vmul.f32 %v3699_v33, %v3626_v44  ;;  %v1573_v55 = vmul.f32 %v3699_v33, %v3628_v47 }
 0x347   : > { %v1922_v39 = vmax.f32 %v1890_v32, 0.0  ;;  %v1654_v49 = vmul.f32 %v3702_v42, %v3630_v40  ;;  %2002 = vmatpush1.bf16.msra.mxu0 %v1940_v4  ;;  %v1662_v52 = vmul.f32 %v3702_v42, %v3632_v59  ;;  %v1775_v31 = vmul.f32 %v3705_v34, %v3644_v13 }
 0x348   : > { %v1889_v19 = vadd.f32 %v3742_v26, %v1832_v23  ;;  %v1913_v9 = vmax.f32 %v1881_v17, 0.0  ;;  %v1783_v21 = vmul.f32 %v3705_v34, %v3646_v7  ;;  %v1567_v33 = vmul.f32 %v3708_v29, %v3626_v44 }
 0x349   : > { %v1943_v12 = vpack.c.bf16 %v1922_v39, %v1914_v22  ;;  %v1686_v58 = vadd.f32 %v1654_v49, %v1565_v54  ;;  %v1694_v32 = vadd.f32 %v1662_v52, %v1573_v55  ;;  %v1575_v4 = vmul.f32 %v3708_v29, %v3628_v47  ;;  %v3886_v39 = vpop.permute.xlu1 %1845 }
 0x34a   : > { %v1921_v2 = vmax.f32 %v1889_v19, 0.0  ;;  %v1656_v17 = vmul.f32 %v3711_v63, %v3630_v40  ;;  %v1664_v22 = vmul.f32 %v3711_v63, %v3632_v59  ;;  %v1777_v23 = vmul.f32 %v3714_v16, %v3644_v13  ;;  %v3890_v19 = vpop.permute.xlu0 %1850 }
 0x34b   : > { %2054 = vmatprep.subr.bf16.mxu1 %v1943_v12  ;;  %v1807_v42 = vadd.f32 %v1775_v31, %v1686_v58  ;;  %v1785_v34 = vmul.f32 %v3714_v16, %v3646_v7  ;;  %v1815_v55 = vadd.f32 %v1783_v21, %v1694_v32  ;;  %v1685_v29 = vadd.f32 %v3657_v56, %v3649_v8  ;;  %v4206_v32 = vld [vmem:[#allocation3_spill] sm:$0xff] }
 0x34c   : > { %v1942_v54 = vpack.c.bf16 %v1921_v2, %v1913_v9  ;;  %v1688_v49 = vadd.f32 %v1656_v17, %v1567_v33  ;;  %v1696_v31 = vadd.f32 %v1664_v22, %v1575_v4  ;;  %v1693_v63 = vadd.f32 %v3660_v10, %v3652_v53  ;;  %v4205_v33 = vld [vmem:[#allocation2_spill] sm:$0xff] }
 0x34d   : > { %v1864_v52 = vadd.f32 %v3886_v39, %v1807_v42  ;;  %v1687_v12 = vadd.f32 %v3681_v1, %v3673_v38  ;;  %v1872_v16 = vadd.f32 %v3890_v19, %v1815_v55  ;;  %v1806_v58 = vadd.f32 %v3665_v61, %v1685_v29  ;;  %v4207_v38 = vld [vmem:[#allocation4_spill] sm:$0xff] }
 0x34e   : > { %2055 = vmatpush1.bf16.msra.mxu1 %v1942_v54  ;;  %v1809_v9 = vadd.f32 %v1777_v23, %v1688_v49  ;;  %v1695_v8 = vadd.f32 %v3684_v36, %v3676_v27  ;;  %v1817_v21 = vadd.f32 %v1785_v34, %v1696_v31  ;;  %v1814_v2 = vadd.f32 %v4205_v33, %v1693_v63  ;;  %v3927_v33 = vld [vmem:[%s4176_s2 + $0x20] sm:$0xff]  }
 0x34f   : > { %v1896_v56 = vmax.f32 %v1864_v52, 0.0  ;;  %v1808_v4 = vadd.f32 %v4206_v32, %v1687_v12  ;;  %v1904_v17 = vmax.f32 %v1872_v16, 0.0  ;;  %v1863_v10 = vadd.f32 %v3886_v39, %v1806_v58 }
 0x350   : > { %v1866_v53 = vadd.f32 %v3886_v39, %v1809_v9  ;;  %v1816_v1 = vadd.f32 %v4207_v38, %v1695_v8  ;;  %v1874_v42 = vadd.f32 %v3890_v19, %v1817_v21  ;;  %v1871_v61 = vadd.f32 %v3890_v19, %v1814_v2 }
 0x351   : > { %v1865_v22 = vadd.f32 %v3886_v39, %v1808_v4  ;;  %v1585_v27 = vmul.f32 %v3803_v11, %v3614_v28  ;;  %v1933_v36 = vpack.c.bf16 %v1904_v17, %v1896_v56  ;;  %v1895_v34 = vmax.f32 %v1863_v10, 0.0 }
 0x352   : > { %v1898_v23 = vmax.f32 %v1866_v53, 0.0  ;;  %v1873_v54 = vadd.f32 %v3890_v19, %v1816_v1  ;;  %v1906_v55 = vmax.f32 %v1874_v42, 0.0  ;;  %v1903_v49 = vmax.f32 %v1871_v61, 0.0 }
 0x353   : > { %v1897_v29 = vmax.f32 %v1865_v22, 0.0  ;;  %v1593_v52 = vmul.f32 %v3803_v11, %v3616_v35  ;;  %2003 = vmatprep.subr.bf16.mxu0 %v1933_v36  ;;  %v1674_v63 = vmul.f32 %v3806_v62, %v3618_v51  ;;  %v1682_v12 = vmul.f32 %v3806_v62, %v3620_v14 }
 0x354   : > { %v1905_v31 = vmax.f32 %v1873_v54, 0.0  ;;  %v1795_v16 = vmul.f32 %v3809_v18, %v3622_v60  ;;  %v1935_v9 = vpack.c.bf16 %v1906_v55, %v1898_v23  ;;  %v1932_v58 = vpack.c.bf16 %v1903_v49, %v1895_v34 }
 0x355   : > { %v1803_v8 = vmul.f32 %v3809_v18, %v3624_v46  ;;  %v1587_v56 = vmul.f32 %v3849_v41, %v3614_v28  ;;  %v1706_v2 = vadd.f32 %v1674_v63, %v1585_v27  ;;  %v1714_v32 = vadd.f32 %v1682_v12, %v1593_v52 }
 0x356   : > { %v1934_v21 = vpack.c.bf16 %v1905_v31, %v1897_v29  ;;  %v1595_v4 = vmul.f32 %v3849_v41, %v3616_v35  ;;  %2056 = vmatprep.subr.bf16.mxu1 %v1935_v9  ;;  %2004 = vmatpush1.bf16.msra.mxu0 %v1932_v58  ;;  %v1676_v17 = vmul.f32 %v3852_v15, %v3618_v51 }
 0x357   : > { %v1684_v53 = vmul.f32 %v3852_v15, %v3620_v14  ;;  %v1797_v28 = vmul.f32 %v3855_v6, %v3622_v60  ;;  %v1827_v10 = vadd.f32 %v1795_v16, %v1706_v2  ;;  %v1835_v38 = vadd.f32 %v1803_v8, %v1714_v32 }
 0x358   : > { %2057 = vmatpush1.bf16.msra.mxu1 %v1934_v21  ;;  %v1805_v1 = vmul.f32 %v3855_v6, %v3624_v46  ;;  %v1705_v35 = vadd.f32 %v3782_v45, %v3770_v43  ;;  %v1708_v42 = vadd.f32 %v1676_v17, %v1587_v56  ;;  %v1713_v51 = vadd.f32 %v3785_v3, %v3773_v48 }
 0x359   : > { %v1716_v61 = vadd.f32 %v1684_v53, %v1595_v4  ;;  %v1707_v14 = vadd.f32 %v3831_v25, %v3819_v0  ;;  %2919 = vmatmul.mubr.msk.bf16.vlgmr.msra.gmra.mxu0 %vm760_vm0, %v3927_v33  ;;  %v1884_v60 = vadd.f32 %v3740_v30, %v1827_v10  ;;  %v1892_v22 = vadd.f32 %v3742_v26, %v1835_v38  ;;  %v4209_v38 = vld [vmem:[#allocation5_spill] sm:$0xff] }
 0x35a   : > { %v1826_v46 = vadd.f32 %v3794_v24, %v1705_v35  ;;  %v1715_v43 = vadd.f32 %v3834_v57, %v3822_v37  ;;  %v4208_v45 = vmov 0   ;;  %v1829_v48 = vadd.f32 %v1797_v28, %v1708_v42  ;;  %v4212_v35 = vld [vmem:[#allocation8_spill] sm:$0xff] }
 0x35b   : > { %2921 = vmatmul.mubr.msk.bf16.vlgmr.msra.gmra.mxu1 %vm760_vm0, %v3927_v33  ;;  %2031 = vmatprep.mubr.bf16.mxu0 %v4208_v45  ;;  %v1837_v3 = vadd.f32 %v1805_v1, %v1716_v61  ;;  %v1834_v0 = vadd.f32 %v3797_v20, %v1713_v51  ;;  %v1916_v25 = vmax.f32 %v1884_v60, 0.0  ;;  %v1924_v27 = vmax.f32 %v1892_v22, 0.0  ;;  %v3966_v20 = vld [vmem:[%s4176_s2 + $0x28] sm:$0xff]   ;;  %v4215_v60 = vld [vmem:[#allocation9_spill] sm:$0xff] }
 0x35c   : > { %2084 = vmatprep.mubr.bf16.mxu1 %v4208_v45  ;;  %v1883_v36 = vadd.f32 %v3740_v30, %v1826_v46  ;;  %v1828_v24 = vadd.f32 %v3843_v50, %v1707_v14  ;;  %v1886_v23 = vadd.f32 %v3740_v30, %v1829_v48  ;;  %v1836_v34 = vadd.f32 %v3846_v5, %v1715_v43  ;;  %v4210_v1 = vld [vmem:[#allocation7_spill] sm:$0xff]  ;;  %v4217_v46 = vld [vmem:[#allocation12_spill] sm:$0xff]  ;;  %v4218_v43 = vld [vmem:[#allocation14_spill] sm:$0xff] }
 0x35d   : > { %v1894_v37 = vadd.f32 %v3742_v26, %v1837_v3  ;;  %v1891_v57 = vadd.f32 %v3742_v26, %v1834_v0  ;;  %v1945_v54 = vpack.c.bf16 %v1924_v27, %v1916_v25  ;;  %v1569_v50 = vmul.f32 %v3803_v11, %v3626_v44  ;;  %v4219_v27 = vld [vmem:[#allocation15_spill] sm:$0xff] }
 0x35e   : > { %v1915_v55 = vmax.f32 %v1883_v36, 0.0  ;;  %v1885_v49 = vadd.f32 %v3740_v30, %v1828_v24  ;;  %v1918_v29 = vmax.f32 %v1886_v23, 0.0  ;;  %v1893_v63 = vadd.f32 %v3742_v26, %v1836_v34 }
 0x35f   : > { %v1926_v52 = vmax.f32 %v1894_v37, 0.0  ;;  %v1923_v31 = vmax.f32 %v1891_v57, 0.0  ;;  %2107 = vmatprep.subr.bf16.mxu0 %v1945_v54  ;;  %v1577_v5 = vmul.f32 %v3803_v11, %v3628_v47  ;;  %v1658_v16 = vmul.f32 %v3806_v62, %v3630_v40  ;;  %v4220_v57 = vld [vmem:[#allocation16_spill] sm:$0xff] }
 0x360   : > { %v1917_v12 = vmax.f32 %v1885_v49, 0.0  ;;  %v1666_v9 = vmul.f32 %v3806_v62, %v3632_v59  ;;  %v1925_v8 = vmax.f32 %v1893_v63, 0.0  ;;  %v1779_v56 = vmul.f32 %v3809_v18, %v3644_v13 }
 0x361   : > { %v1947_v30 = vpack.c.bf16 %v1926_v52, %v1918_v29  ;;  %v1944_v58 = vpack.c.bf16 %v1923_v31, %v1915_v55  ;;  %2920 = vmatmul.mubr.msk.bf16.gmra.mxu0 %vm760_vm0, %v3966_v20  ;;  %v1690_v26 = vadd.f32 %v1658_v16, %v1569_v50  ;;  %v1787_v11 = vmul.f32 %v3809_v18, %v3646_v7 }
 0x362   : > { %v1698_v21 = vadd.f32 %v1666_v9, %v1577_v5  ;;  %v1571_v2 = vmul.f32 %v3849_v41, %v3626_v44  ;;  %v1946_v62 = vpack.c.bf16 %v1925_v8, %v1917_v12  ;;  %v1579_v32 = vmul.f32 %v3849_v41, %v3628_v47  ;;  %v4211_v41 = vld [vmem:[#allocation6_spill] sm:$0xff]  ;;  %2127 = vmatprep.mubr.bf16.mxu0 %v4208_v45 }
 0x363   : > { %2922 = vmatmul.mubr.msk.bf16.gmra.mxu1 %vm760_vm0, %v3966_v20  ;;  %2160 = vmatprep.subr.bf16.mxu1 %v1947_v30  ;;  %v1660_v4 = vmul.f32 %v3852_v15, %v3630_v40  ;;  %v1811_v17 = vadd.f32 %v1779_v56, %v1690_v26  ;;  %v1668_v18 = vmul.f32 %v3852_v15, %v3632_v59  ;;  %v4213_v59 = vld [vmem:[#allocation11_spill] sm:$0xff]  ;;  %v4214_v15 = vld [vmem:[#allocation13_spill] sm:$0xff]  ;;  %v4032_v26 = vpop.permute.xlu1 %1965 }
 0x364   : > { %2108 = vmatpush1.bf16.msra.mxu0 %v1944_v58  ;;  %v1819_v53 = vadd.f32 %v1787_v11, %v1698_v21  ;;  %v1781_v44 = vmul.f32 %v3855_v6, %v3644_v13  ;;  %2161 = vmatpush1.bf16.msra.mxu1 %v1946_v62  ;;  %v1789_v10 = vmul.f32 %v3855_v6, %v3646_v7  ;;  %v4216_v7 = vld [vmem:[#allocation10_spill] sm:$0xff]  ;;  %v4034_v21 = vpop.permute.xlu0 %1970 }
 0x365   : > { %v1692_v28 = vadd.f32 %v1660_v4, %v1571_v2  ;;  %v1689_v47 = vadd.f32 %v4210_v1, %v4209_v38  ;;  %v1697_v40 = vadd.f32 %v4212_v35, %v4211_v41  ;;  %v1868_v42 = vadd.f32 %v3886_v39, %v1811_v17  ;;  %2180 = vmatprep.mubr.bf16.mxu1 %v4208_v45 }
 0x366   : > { %v1876_v61 = vadd.f32 %v3890_v19, %v1819_v53  ;;  %v1700_v51 = vadd.f32 %v1668_v18, %v1579_v32  ;;  %v1691_v14 = vadd.f32 %v4214_v15, %v4213_v59  ;;  %v1699_v48 = vadd.f32 %v4218_v43, %v4217_v46 }
 0x367   : > { %v1813_v13 = vadd.f32 %v1781_v44, %v1692_v28  ;;  %v1810_v22 = vadd.f32 %v4215_v60, %v1689_v47  ;;  %v1818_v6 = vadd.f32 %v4216_v7, %v1697_v40  ;;  %v1900_v3 = vmax.f32 %v1868_v42, 0.0  ;;  %v4036_v17 = vpop.permute.xlu1 %1955 }
 0x368   : > { %v1908_v0 = vmax.f32 %v1876_v61, 0.0  ;;  %v1821_v25 = vadd.f32 %v1789_v10, %v1700_v51  ;;  %v1812_v36 = vadd.f32 %v4219_v27, %v1691_v14  ;;  %v1820_v34 = vadd.f32 %v4220_v57, %v1699_v48  ;;  %v4038_v53 = vpop.permute.xlu0 %1960 }
 0x369   : > { %v1870_v24 = vadd.f32 %v3886_v39, %v1813_v13  ;;  %v1867_v23 = vadd.f32 %v3886_v39, %v1810_v22  ;;  %v1875_v37 = vadd.f32 %v3890_v19, %v1818_v6 }
 0x36a   : > { %v1937_v54 = vpack.c.bf16 %v1908_v0, %v1900_v3  ;;  %v1878_v55 = vadd.f32 %v3890_v19, %v1821_v25  ;;  %v1869_v49 = vadd.f32 %v3886_v39, %v1812_v36  ;;  %v1877_v31 = vadd.f32 %v3890_v19, %v1820_v34 }
 0x36b   : > { %v1902_v50 = vmax.f32 %v1870_v24, 0.0  ;;  %v1899_v29 = vmax.f32 %v1867_v23, 0.0  ;;  %v1907_v52 = vmax.f32 %v1875_v37, 0.0 }
 0x36c   : > { %2109 = vmatprep.subr.bf16.mxu0 %v1937_v54  ;;  %v1910_v63 = vmax.f32 %v1878_v55, 0.0  ;;  %v1901_v12 = vmax.f32 %v1869_v49, 0.0  ;;  %v1909_v16 = vmax.f32 %v1877_v31, 0.0 }
 0x36d   : > { %v1936_v5 = vpack.c.bf16 %v1907_v52, %v1899_v29 }
 0x36e   : > { %v1939_v9 = vpack.c.bf16 %v1910_v63, %v1902_v50  ;;  %v1938_v30 = vpack.c.bf16 %v1909_v16, %v1901_v12 }
 0x36f   : > { %2110 = vmatpush1.bf16.msra.mxu0 %v1936_v5 }
 0x370   : > { %2162 = vmatprep.subr.bf16.mxu1 %v1939_v9  ;;  %v4059_v9 = vld [vmem:[%s4176_s2 + $0x30] sm:$0xff]  }
 0x371   : > { %2163 = vmatpush1.bf16.msra.mxu1 %v1938_v30 }
 0x372   : > { %2923 = vmatmul.mubr.msk.bf16.vlgmr.msra.gmra.mxu0 %vm760_vm0, %v3927_v33 }
 0x373   : > { %2137 = vmatprep.mubr.bf16.mxu0 %v4208_v45 }
 0x374   : > { %2925 = vmatmul.mubr.msk.bf16.vlgmr.msra.gmra.mxu1 %vm760_vm0, %v3927_v33 }
 0x375   : > { %2190 = vmatprep.mubr.bf16.mxu1 %v4208_v45 }
 0x37a   : > { %2924 = vmatmul.mubr.msk.bf16.gmra.mxu0 %vm760_vm0, %v3966_v20 }
 0x37b   : > { %2327 = vmatprep.mubr.bf16.mxu0 %v4208_v45 }
 0x37c   : > { %2926 = vmatmul.mubr.msk.bf16.gmra.mxu1 %vm760_vm0, %v3966_v20 }
 0x37d   : > { %2380 = vmatprep.mubr.bf16.mxu1 %v4208_v45 }
 0x419   : > { %v2023_v39 = vpop.f32.mrf.mxu0 }
 0x41a   : > { %v2024_v44 = vadd.f32 %v2023_v39, %v4036_v17 }
 0x41b   : > { %v2076_v19 = vpop.f32.mrf.mxu1  ;;  %v2025_v58 = vpop.f32.mrf.mxu0 }
 0x41c   : > { %v2026_v61 = vadd.f32 %v2025_v58, %v4036_v17  ;;  %v2077_v36 = vadd.f32 %v2076_v19, %v4036_v17  ;;  %v2201_v52 = vmax.f32 %v2024_v44, 0.0 }
 0x41d   : > { %v2078_v8 = vpop.f32.mrf.mxu1  ;;  %v2027_v56 = vpop.f32.mrf.mxu0 }
 0x41e   : > { %v2079_v51 = vadd.f32 %v2078_v8, %v4036_v17  ;;  %v2028_v13 = vadd.f32 %v2027_v56, %v4038_v53  ;;  %v2202_v24 = vmax.f32 %v2026_v61, 0.0  ;;  %v2203_v63 = vmax.f32 %v2077_v36, 0.0 }
 0x41f   : > { %v2080_v33 = vpop.f32.mrf.mxu1  ;;  %v2029_v11 = vpop.f32.mrf.mxu0 }
 0x420   : > { %v2030_v28 = vadd.f32 %v2029_v11, %v4038_v53  ;;  %v2081_v60 = vadd.f32 %v2080_v33, %v4038_v53  ;;  %v2204_v57 = vmax.f32 %v2079_v51, 0.0  ;;  %v2209_v34 = vmax.f32 %v2028_v13, 0.0 }
 0x421   : > { %v2082_v2 = vpop.f32.mrf.mxu1  ;;  %v2033_v62 = vpop.f32.mrf.mxu0 }
 0x422   : > { %v2083_v47 = vadd.f32 %v2082_v2, %v4038_v53  ;;  %v2034_v41 = vadd.f32 %v2033_v62, %v4032_v26  ;;  %v2210_v6 = vmax.f32 %v2030_v28, 0.0  ;;  %v2211_v49 = vmax.f32 %v2081_v60, 0.0  ;;  %v4070_v2 = vld [vmem:[%s4176_s2 + $0x38] sm:$0xff]  }
 0x423   : > { %v2086_v32 = vpop.f32.mrf.mxu1  ;;  %v2035_v4 = vpop.f32.mrf.mxu0  ;;  %v2238_v12 = vpack.c.bf16 %v2209_v34, %v2201_v52 }
 0x424   : > { %v2036_v10 = vadd.f32 %v2035_v4, %v4032_v26  ;;  %v2087_v59 = vadd.f32 %v2086_v32, %v4032_v26  ;;  %v2212_v3 = vmax.f32 %v2083_v47, 0.0  ;;  %v2217_v0 = vmax.f32 %v2034_v41, 0.0 }
 0x425   : > { %v2088_v20 = vpop.f32.mrf.mxu1  ;;  %v2037_v18 = vpop.f32.mrf.mxu0  ;;  %v2239_v50 = vpack.c.bf16 %v2210_v6, %v2202_v24  ;;  %v2240_v16 = vpack.c.bf16 %v2211_v49, %v2203_v63 }
 0x426   : > { %v2038_v38 = vadd.f32 %v2037_v18, %v4034_v21  ;;  %v2089_v35 = vadd.f32 %v2088_v20, %v4032_v26  ;;  %v2218_v46 = vmax.f32 %v2036_v10, 0.0  ;;  %v2219_v23 = vmax.f32 %v2087_v59, 0.0 }
 0x427   : > { %v2090_v1 = vpop.f32.mrf.mxu1  ;;  %v2039_v42 = vpop.f32.mrf.mxu0  ;;  %v2241_v31 = vpack.c.bf16 %v2212_v3, %v2204_v57 }
 0x428   : > { %v2091_v40 = vadd.f32 %v2090_v1, %v4034_v21  ;;  %v2040_v15 = vadd.f32 %v2039_v42, %v4034_v21  ;;  %v2225_v22 = vmax.f32 %v2038_v38, 0.0  ;;  %v2220_v25 = vmax.f32 %v2089_v35, 0.0 }
 0x429   : > { %v2092_v14 = vpop.f32.mrf.mxu1 }
 0x42a   : > { %v2093_v7 = vadd.f32 %v2092_v14, %v4034_v21  ;;  %v2227_v43 = vmax.f32 %v2091_v40, 0.0  ;;  %v2226_v48 = vmax.f32 %v2040_v15, 0.0  ;;  %v2246_v54 = vpack.c.bf16 %v2225_v22, %v2217_v0 }
 0x42c   : > { %v2228_v27 = vmax.f32 %v2093_v7, 0.0  ;;  %v2247_v37 = vpack.c.bf16 %v2226_v48, %v2218_v46  ;;  %v2248_v29 = vpack.c.bf16 %v2227_v43, %v2219_v23 }
 0x42e   : > { %v2249_v55 = vpack.c.bf16 %v2228_v27, %v2220_v25  ;;  %2307 = vmatprep.subr.bf16.mxu0 %v2247_v37 }
 0x42f   : > { %2308 = vmatpush1.bf16.msra.mxu0 %v2246_v54 }
 0x430   : > { %2360 = vmatprep.subr.bf16.mxu1 %v2249_v55  ;;  %2309 = vmatprep.subr.bf16.mxu0 %v2239_v50 }
 0x431   : > { %2361 = vmatpush1.bf16.msra.mxu1 %v2248_v29 }
 0x432   : > { %v2129_v5 = vpop.f32.mrf.mxu0  ;;  %2362 = vmatprep.subr.bf16.mxu1 %v2241_v31 }
 0x433   : > { %2310 = vmatpush1.bf16.msra.mxu0 %v2238_v12  ;;  %v2130_v10 = vadd.f32 %v2129_v5, %v4036_v17 }
 0x434   : > { %v2182_v30 = vpop.f32.mrf.mxu1  ;;  %v2131_v39 = vpop.f32.mrf.mxu0 }
 0x435   : > { %2363 = vmatpush1.bf16.msra.mxu1 %v2240_v16  ;;  %v2132_v38 = vadd.f32 %v2131_v39, %v4036_v17  ;;  %v2183_v24 = vadd.f32 %v2182_v30, %v4036_v17  ;;  %v2205_v55 = vmax.f32 %v2130_v10, 0.0  ;;  %v4106_v16 = vpop.permute.xlu1 %2271  ;;  %v4108_v30 = vpop.permute.xlu0 %2276 }
 0x436   : > { %v2184_v19 = vpop.f32.mrf.mxu1  ;;  %v2133_v58 = vpop.f32.mrf.mxu0  ;;  %2937 = vmatmul.mubr.msk.bf16.vlgmr.msra.gmra.mxu0 %vm760_vm0, %v4059_v9 }
 0x437   : > { %2337 = vmatprep.mubr.bf16.mxu0 %v4208_v45  ;;  %v2185_v51 = vadd.f32 %v2184_v19, %v4036_v17  ;;  %v2134_v59 = vadd.f32 %v2133_v58, %v4038_v53  ;;  %v2206_v46 = vmax.f32 %v2132_v38, 0.0  ;;  %v2207_v50 = vmax.f32 %v2183_v24, 0.0 }
 0x438   : > { %v2186_v8 = vpop.f32.mrf.mxu1  ;;  %v2135_v56 = vpop.f32.mrf.mxu0  ;;  %2939 = vmatmul.mubr.msk.bf16.vlgmr.msra.gmra.mxu1 %vm760_vm0, %v4059_v9 }
 0x439   : > { %2390 = vmatprep.mubr.bf16.mxu1 %v4208_v45  ;;  %v2136_v18 = vadd.f32 %v2135_v56, %v4038_v53  ;;  %v2187_v43 = vadd.f32 %v2186_v8, %v4038_v53  ;;  %v2213_v23 = vmax.f32 %v2134_v59, 0.0  ;;  %v2208_v57 = vmax.f32 %v2185_v51, 0.0 }
 0x43a   : > { %v2188_v33 = vpop.f32.mrf.mxu1  ;;  %v2139_v11 = vpop.f32.mrf.mxu0 }
 0x43b   : > { %v2140_v1 = vadd.f32 %v2139_v11, %v4032_v26  ;;  %v2189_v35 = vadd.f32 %v2188_v33, %v4038_v53  ;;  %v2214_v60 = vmax.f32 %v2136_v18, 0.0  ;;  %v2242_v29 = vpack.c.bf16 %v2213_v23, %v2205_v55  ;;  %v4110_v33 = vpop.permute.xlu1 %2261 }
 0x43c   : > { %v2192_v62 = vpop.f32.mrf.mxu1  ;;  %v2141_v32 = vpop.f32.mrf.mxu0 }
 0x43d   : > { %v2142_v44 = vadd.f32 %v2141_v32, %v4032_v26  ;;  %v2193_v15 = vadd.f32 %v2192_v62, %v4032_v26  ;;  %v2221_v48 = vmax.f32 %v2140_v1, 0.0  ;;  %v2216_v0 = vmax.f32 %v2189_v35, 0.0 }
 0x43e   : > { %v2194_v4 = vpop.f32.mrf.mxu1  ;;  %v2143_v20 = vpop.f32.mrf.mxu0  ;;  %2938 = vmatmul.mubr.msk.bf16.gmra.mxu0 %vm760_vm0, %v4070_v2  ;;  %v2243_v34 = vpack.c.bf16 %v2214_v60, %v2206_v46 }
 0x43f   : > { %v2144_v28 = vadd.f32 %v2143_v20, %v4034_v21  ;;  %2433 = vmatprep.mubr.bf16.mxu0 %v4208_v45  ;;  %v2195_v40 = vadd.f32 %v2194_v4, %v4032_v26  ;;  %v2222_v22 = vmax.f32 %v2142_v44, 0.0  ;;  %v2223_v26 = vmax.f32 %v2193_v15, 0.0 }
 0x440   : > { %v2196_v47 = vpop.f32.mrf.mxu1  ;;  %v2145_v41 = vpop.f32.mrf.mxu0  ;;  %2940 = vmatmul.mubr.msk.bf16.gmra.mxu1 %vm760_vm0, %v4070_v2  ;;  %v2245_v53 = vpack.c.bf16 %v2216_v0, %v2208_v57 }
 0x441   : > { %v2197_v42 = vadd.f32 %v2196_v47, %v4034_v21  ;;  %v2146_v61 = vadd.f32 %v2145_v41, %v4034_v21  ;;  %2486 = vmatprep.mubr.bf16.mxu1 %v4208_v45  ;;  %v2229_v14 = vmax.f32 %v2144_v28, 0.0  ;;  %v2224_v25 = vmax.f32 %v2195_v40, 0.0 }
 0x442   : > { %v2198_v13 = vpop.f32.mrf.mxu1 }
 0x443   : > { %v2230_v7 = vmax.f32 %v2146_v61, 0.0  ;;  %v2199_v6 = vadd.f32 %v2198_v13, %v4034_v21  ;;  %v2231_v3 = vmax.f32 %v2197_v42, 0.0  ;;  %v2250_v37 = vpack.c.bf16 %v2229_v14, %v2221_v48 }
 0x444   : > { %v2215_v21 = vmax.f32 %v2187_v43, 0.0 }
 0x445   : > { %v2251_v27 = vpack.c.bf16 %v2230_v7, %v2222_v22  ;;  %v2232_v36 = vmax.f32 %v2199_v6, 0.0  ;;  %v2252_v49 = vpack.c.bf16 %v2231_v3, %v2223_v26 }
 0x446   : > { %v2244_v52 = vpack.c.bf16 %v2215_v21, %v2207_v50 }
 0x447   : > { %v2253_v54 = vpack.c.bf16 %v2232_v36, %v2224_v25  ;;  %2413 = vmatprep.subr.bf16.mxu0 %v2251_v27 }
 0x448   : > { %2414 = vmatpush1.bf16.msra.mxu0 %v2250_v37 }
 0x449   : > { %2466 = vmatprep.subr.bf16.mxu1 %v2253_v54  ;;  %2415 = vmatprep.subr.bf16.mxu0 %v2243_v34 }
 0x44a   : > { %2467 = vmatpush1.bf16.msra.mxu1 %v2252_v49 }
 0x44b   : > { %2468 = vmatprep.subr.bf16.mxu1 %v2245_v53 }
 0x44c   : > { %2416 = vmatpush1.bf16.msra.mxu0 %v2242_v29 }
 0x44e   : > { %2469 = vmatpush1.bf16.msra.mxu1 %v2244_v52 }
 0x44f   : > { %2941 = vmatmul.mubr.msk.bf16.vlgmr.msra.gmra.mxu0 %vm760_vm0, %v4059_v9 }
 0x450   : > { %2443 = vmatprep.mubr.bf16.mxu0 %v4208_v45 }
 0x451   : > { %2943 = vmatmul.mubr.msk.bf16.vlgmr.msra.gmra.mxu1 %vm760_vm0, %v4059_v9 }
 0x452   : > { %2496 = vmatprep.mubr.bf16.mxu1 %v4208_v45 }
 0x457   : > { %2942 = vmatmul.mubr.msk.bf16.gmra.mxu0 %vm760_vm0, %v4070_v2 }
 0x458   : > { %2599 = vmatprep.mubr.bf16.mxu0 %v4208_v45 }
 0x459   : > { %2944 = vmatmul.mubr.msk.bf16.gmra.mxu1 %vm760_vm0, %v4070_v2  ;;  %v4112_v2 = vpop.permute.xlu0 %2266 }
 0x45a   : > { %2640 = vmatprep.mubr.bf16.mxu1 %v4208_v45 }
 0x4f6   : > { %v2329_v17 = vpop.f32.mrf.mxu0 }
 0x4f7   : > { %v2330_v32 = vadd.f32 %v2329_v17, %v4110_v33  ;;  %v4133_v17 = vld [vmem:[%s4179_s5 + $0x2] sm:$0x3] }
 0x4f8   : > { %v2382_v31 = vpop.f32.mrf.mxu1  ;;  %v2331_v63 = vpop.f32.mrf.mxu0 }
 0x4f9   : > { %v2332_v41 = vadd.f32 %v2331_v63, %v4110_v33  ;;  %v2383_v3 = vadd.f32 %v2382_v31, %v4110_v33  ;;  %v2507_v54 = vmax.f32 %v2330_v32, 0.0 }
 0x4fa   : > { %v2384_v12 = vpop.f32.mrf.mxu1  ;;  %v2333_v5 = vpop.f32.mrf.mxu0 }
 0x4fb   : > { %v2385_v35 = vadd.f32 %v2384_v12, %v4110_v33  ;;  %v2334_v51 = vadd.f32 %v2333_v5, %v4112_v2  ;;  %v2508_v0 = vmax.f32 %v2332_v41, 0.0  ;;  %v2509_v21 = vmax.f32 %v2383_v3, 0.0 }
 0x4fc   : > { %v2386_v9 = vpop.f32.mrf.mxu1  ;;  %v2335_v39 = vpop.f32.mrf.mxu0 }
 0x4fd   : > { %v2336_v4 = vadd.f32 %v2335_v39, %v4112_v2  ;;  %v2387_v59 = vadd.f32 %v2386_v9, %v4112_v2  ;;  %v2510_v36 = vmax.f32 %v2385_v35, 0.0  ;;  %v2515_v24 = vmax.f32 %v2334_v51, 0.0 }
 0x4fe   : > { %v2388_v19 = vpop.f32.mrf.mxu1  ;;  %v2339_v58 = vpop.f32.mrf.mxu0 }
 0x4ff   : > { %v2389_v28 = vadd.f32 %v2388_v19, %v4112_v2  ;;  %v2340_v10 = vadd.f32 %v2339_v58, %v4106_v16  ;;  %v2516_v13 = vmax.f32 %v2336_v4, 0.0  ;;  %v2517_v37 = vmax.f32 %v2387_v59, 0.0 }
 0x500   : > { %v2392_v8 = vpop.f32.mrf.mxu1  ;;  %v2341_v56 = vpop.f32.mrf.mxu0  ;;  %v2541_v49 = vpack.c.bf16 %v2515_v24, %v2507_v54 }
 0x501   : > { %v2342_v20 = vadd.f32 %v2341_v56, %v4106_v16  ;;  %v2393_v40 = vadd.f32 %v2392_v8, %v4106_v16  ;;  %v2518_v6 = vmax.f32 %v2389_v28, 0.0  ;;  %v2523_v46 = vmax.f32 %v2340_v10, 0.0  ;;  %v2562_v54 = vpop.permute.xlu1 %2561 }
 0x502   : > { %v2394_v11 = vpop.f32.mrf.mxu1  ;;  %v2343_v62 = vpop.f32.mrf.mxu0  ;;  %v2542_v57 = vpack.c.bf16 %v2516_v13, %v2508_v0  ;;  %v2543_v50 = vpack.c.bf16 %v2517_v37, %v2509_v21 }
 0x503   : > { %v2344_v18 = vadd.f32 %v2343_v62, %v4108_v30  ;;  %v2395_v38 = vadd.f32 %v2394_v11, %v4106_v16  ;;  %v2524_v60 = vmax.f32 %v2342_v20, 0.0  ;;  %v2525_v25 = vmax.f32 %v2393_v40, 0.0 }
 0x504   : > { %v2396_v44 = vpop.f32.mrf.mxu1  ;;  %v2345_v47 = vpop.f32.mrf.mxu0  ;;  %v2544_v55 = vpack.c.bf16 %v2518_v6, %v2510_v36 }
 0x505   : > { %v2397_v1 = vadd.f32 %v2396_v44, %v4108_v30  ;;  %v2346_v42 = vadd.f32 %v2345_v47, %v4108_v30  ;;  %v2531_v15 = vmax.f32 %v2344_v18, 0.0  ;;  %v2526_v43 = vmax.f32 %v2395_v38, 0.0 }
 0x506   : > { %v2398_v61 = vpop.f32.mrf.mxu1 }
 0x507   : > { %v2399_v14 = vadd.f32 %v2398_v61, %v4108_v30  ;;  %v2533_v22 = vmax.f32 %v2397_v1, 0.0  ;;  %v2532_v7 = vmax.f32 %v2346_v42, 0.0  ;;  %v2549_v23 = vpack.c.bf16 %v2531_v15, %v2523_v46 }
 0x509   : > { %v2534_v48 = vmax.f32 %v2399_v14, 0.0  ;;  %v2550_v27 = vpack.c.bf16 %v2532_v7, %v2524_v60  ;;  %v2551_v34 = vpack.c.bf16 %v2533_v22, %v2525_v25 }
 0x50b   : > { %v2552_v26 = vpack.c.bf16 %v2534_v48, %v2526_v43  ;;  %2579 = vmatprep.subr.bf16.mxu0 %v2550_v27 }
 0x50c   : > { %2580 = vmatpush1.bf16.msra.mxu0 %v2549_v23 }
 0x50d   : > { %2620 = vmatprep.subr.bf16.mxu1 %v2552_v26  ;;  %2581 = vmatprep.subr.bf16.mxu0 %v2542_v57 }
 0x50e   : > { %2621 = vmatpush1.bf16.msra.mxu1 %v2551_v34 }
 0x50f   : > { %v2435_v53 = vpop.f32.mrf.mxu0  ;;  %2622 = vmatprep.subr.bf16.mxu1 %v2544_v55 }
 0x510   : > { %2582 = vmatpush1.bf16.msra.mxu0 %v2541_v49  ;;  %v2436_v4 = vadd.f32 %v2435_v53, %v4110_v33 }
 0x511   : > { %v2488_v29 = vpop.f32.mrf.mxu1  ;;  %v2437_v52 = vpop.f32.mrf.mxu0 }
 0x512   : > { %2623 = vmatpush1.bf16.msra.mxu1 %v2543_v50  ;;  %v2438_v20 = vadd.f32 %v2437_v52, %v4110_v33  ;;  %v2489_v48 = vadd.f32 %v2488_v29, %v4110_v33  ;;  %v2511_v24 = vmax.f32 %v2436_v4, 0.0 }
 0x513   : > { %v2490_v31 = vpop.f32.mrf.mxu1  ;;  %v2439_v63 = vpop.f32.mrf.mxu0  ;;  %2947 = vmatmul.mubr.msk.bf16.vlgmr.msra.gmra.mxu0 %vm760_vm0, %v4133_v17 }
 0x514   : > { %2681 = vmatprep.mubr.bf16.mxu0 %v4208_v45  ;;  %v2491_v47 = vadd.f32 %v2490_v31, %v4110_v33  ;;  %v2440_v41 = vadd.f32 %v2439_v63, %v4112_v2  ;;  %v2512_v14 = vmax.f32 %v2438_v20, 0.0  ;;  %v2513_v26 = vmax.f32 %v2489_v48, 0.0 }
 0x515   : > { %v2492_v12 = vpop.f32.mrf.mxu1  ;;  %v2441_v5 = vpop.f32.mrf.mxu0  ;;  %2948 = vmatmul.mubr.msk.bf16.vlgmr.msra.gmra.mxu1 %vm760_vm0, %v4133_v17 }
 0x516   : > { %2722 = vmatprep.mubr.bf16.mxu1 %v4208_v45  ;;  %v2442_v11 = vadd.f32 %v2441_v5, %v4112_v2  ;;  %v2493_v13 = vadd.f32 %v2492_v12, %v4112_v2  ;;  %v2519_v3 = vmax.f32 %v2440_v41, 0.0  ;;  %v2514_v25 = vmax.f32 %v2491_v47, 0.0 }
 0x517   : > { %v2494_v9 = vpop.f32.mrf.mxu1  ;;  %v2445_v39 = vpop.f32.mrf.mxu0 }
 0x518   : > { %v2446_v18 = vadd.f32 %v2445_v39, %v4106_v16  ;;  %v2495_v28 = vadd.f32 %v2494_v9, %v4112_v2  ;;  %v2520_v61 = vmax.f32 %v2442_v11, 0.0  ;;  %v2545_v37 = vpack.c.bf16 %v2519_v3, %v2511_v24 }
 0x519   : > { %v2498_v19 = vpop.f32.mrf.mxu1  ;;  %v2447_v58 = vpop.f32.mrf.mxu0 }
 0x51a   : > { %v2448_v62 = vadd.f32 %v2447_v58, %v4106_v16  ;;  %v2499_v35 = vadd.f32 %v2498_v19, %v4106_v16  ;;  %v2527_v60 = vmax.f32 %v2446_v18, 0.0  ;;  %v2522_v7 = vmax.f32 %v2495_v28, 0.0 }
 0x51b   : > { %v2500_v8 = vpop.f32.mrf.mxu1  ;;  %v2449_v56 = vpop.f32.mrf.mxu0  ;;  %v2546_v27 = vpack.c.bf16 %v2520_v61, %v2512_v14 }
 0x51c   : > { %v2450_v32 = vadd.f32 %v2449_v56, %v4108_v30  ;;  %v2501_v10 = vadd.f32 %v2500_v8, %v4106_v16  ;;  %v2528_v51 = vmax.f32 %v2448_v62, 0.0  ;;  %v2529_v16 = vmax.f32 %v2499_v35, 0.0 }
 0x51d   : > { %v2502_v44 = vpop.f32.mrf.mxu1  ;;  %v2451_v45 = vpop.f32.mrf.mxu0  ;;  %v2548_v2 = vpack.c.bf16 %v2522_v7, %v2514_v25 }
 0x51e   : > { %v2503_v38 = vadd.f32 %v2502_v44, %v4108_v30  ;;  %v2452_v1 = vadd.f32 %v2451_v45, %v4108_v30  ;;  %v2535_v40 = vmax.f32 %v2450_v32, 0.0  ;;  %v2530_v6 = vmax.f32 %v2501_v10, 0.0 }
 0x51f   : > { %v2504_v42 = vpop.f32.mrf.mxu1 }
 0x520   : > { %v2536_v59 = vmax.f32 %v2452_v1, 0.0  ;;  %v2505_v15 = vadd.f32 %v2504_v42, %v4108_v30  ;;  %v2537_v22 = vmax.f32 %v2503_v38, 0.0  ;;  %v2553_v0 = vpack.c.bf16 %v2535_v40, %v2527_v60 }
 0x521   : > { %v2521_v30 = vmax.f32 %v2493_v13, 0.0 }
 0x522   : > { %v2554_v46 = vpack.c.bf16 %v2536_v59, %v2528_v51  ;;  %v2538_v43 = vmax.f32 %v2505_v15, 0.0  ;;  %v2555_v23 = vpack.c.bf16 %v2537_v22, %v2529_v16 }
 0x523   : > { %v2547_v33 = vpack.c.bf16 %v2521_v30, %v2513_v26 }
 0x524   : > { %v2556_v36 = vpack.c.bf16 %v2538_v43, %v2530_v6  ;;  %2661 = vmatprep.subr.bf16.mxu0 %v2554_v46 }
 0x525   : > { %2662 = vmatpush1.bf16.msra.mxu0 %v2553_v0 }
 0x526   : > { %2702 = vmatprep.subr.bf16.mxu1 %v2556_v36  ;;  %2663 = vmatprep.subr.bf16.mxu0 %v2546_v27 }
 0x527   : > { %2703 = vmatpush1.bf16.msra.mxu1 %v2555_v23 }
 0x528   : > { %2704 = vmatprep.subr.bf16.mxu1 %v2548_v2 }
 0x529   : > { %2664 = vmatpush1.bf16.msra.mxu0 %v2545_v37 }
 0x52b   : > { %2705 = vmatpush1.bf16.msra.mxu1 %v2547_v33 }
 0x52c   : > { %2949 = vmatmul.mubr.msk.bf16.vlgmr.msra.gmra.mxu0 %vm760_vm0, %v4133_v17 }
 0x52e   : > { %2950 = vmatmul.mubr.msk.bf16.vlgmr.msra.gmra.mxu1 %vm760_vm0, %v4133_v17 }
 0x5d3   : > { %v2601_v57 = vpop.f32.mrf.mxu0 }
 0x5d4   : > { %v2602_v21 = vadd.f32 %v2601_v57, %v2562_v54 }
 0x5d5   : > { %v2642_v34 = vpop.f32.mrf.mxu1  ;;  %v2603_v55 = vpop.f32.mrf.mxu0 }
 0x5d6   : > { %v2604_v49 = vadd.f32 %v2603_v55, %v2562_v54  ;;  %v2643_v50 = vadd.f32 %v2642_v34, %v2562_v54 }
 0x5d7   : > { %v2644_v53 = vpop.f32.mrf.mxu1  ;;  %v2605_v52 = vpop.f32.mrf.mxu0 }
 0x5d8   : > { %v2645_v29 = vadd.f32 %v2644_v53, %v2562_v54  ;;  %v2739_v31 = vcombine.low %v2602_v21, %v2604_v49 }
 0x5d9   : > { %v2646_v63 = vpop.f32.mrf.mxu1  ;;  %v2606_v5 = vpop.f32.mrf.mxu0 }
 0x5da   : > { %v2740_v12 = vcombine.low %v2643_v50, %v2645_v29  ;;  %2747 = vst [vmem:[%s322_s19] sm:$0x77] %v2739_v31 }
 0x5db   : > { %v2647_v17 = vpop.f32.mrf.mxu1 }
 0x5dc   : > { %2748 = vst [vmem:[%s322_s19 + $0x8] sm:$0x77] %v2740_v12 }
 0x5ec   : > { %v2683_v9 = vpop.f32.mrf.mxu0 }
 0x5ed   : > { %v2684_v58 = vadd.f32 %v2683_v9, %v2562_v54 }
 0x5ee   : > { %v2724_v39 = vpop.f32.mrf.mxu1  ;;  %v2685_v19 = vpop.f32.mrf.mxu0 }
 0x5ef   : > { %v2686_v8 = vadd.f32 %v2685_v19, %v2562_v54  ;;  %v2725_v62 = vadd.f32 %v2724_v39, %v2562_v54 }
 0x5f0   : > { %v2726_v56 = vpop.f32.mrf.mxu1  ;;  %v2687_v11 = vpop.f32.mrf.mxu0 }
 0x5f1   : > { %v2741_v32 = vcombine.low %v2684_v58, %v2686_v8  ;;  %v2727_v4 = vadd.f32 %v2726_v56, %v2562_v54 }
 0x5f2   : > { %v2728_v20 = vpop.f32.mrf.mxu1  ;;  %v2688_v18 = vpop.f32.mrf.mxu0 }
 0x5f3   : > { %2749 = vst [vmem:[%s322_s19 + $0x10] sm:$0x77] %v2741_v32  ;;  %v2742_v44 = vcombine.low %v2725_v62, %v2727_v4 }
 0x5f4   : > { %v2729_v45 = vpop.f32.mrf.mxu1 }
 0x5f5   : > { %2750 = vst [vmem:[%s322_s19 + $0x18] sm:$0x77] %v2742_v44 }
 0x5f6 PF: > { %s17_s26 = sadd.s32 1, %s3012_s26   ;;  %s4221_s24 = smov %s3008_s25 }
 0x5f7   : > { %p14_p5 = scmp.ge.s32.totalorder %s17_s26, 4   ;;  %s4222_s25 = smov %s4224_s27 }
 0x5f9   :  { %16 = sbr.rel (!%p14_p5) target bundleno = 2 (0x2), region = 94 }

</bundles_post_ra>
